<compile_context>
chip_gen: v7x
topology: tpu7x:2x2x1
jax: 0.10.0
libtpu: 0.0.40
codegen_flags: <defaults>
</compile_context>

<pallas_src>
import functools

import jax
import jax.numpy as jnp
from jax.experimental import pallas as pl
from jax.experimental.pallas import tpu as pltpu


def _round_up(x, m):
    return (x + m - 1) // m * m


def _select_tile_rows(n, max_tile_rows):
    """Row tile: multiple of 128, capped, >=2 grid steps whenever possible."""
    max_tile = max(128, (int(max_tile_rows) // 128) * 128)
    n128 = _round_up(max(int(n), 1), 128)
    two_way = _round_up(-(-n128 // 2), 128)   # ceil(n128/2) rounded up to 128
    return int(min(max_tile, max(128, two_way)))


def _vq_kernel(x_ref, wq_ref, w_ref, w2_ref, q_ref, enc_ref, idx_ref, sse_ref,
               *, n_valid, n_total, idx_mask):
    """One (tile, D) row block of the VQ forward.

    x_ref  : (T, D)  input rows (native dtype)
    wq_ref : (K, D)  bf16 codebook pre-scaled by -2   (distance matmul)
    w_ref  : (K, D)  f32 codebook                     (exact reconstruction)
    w2_ref : (1, K)  f32 |w_k|^2, padded entries = 3e38 so they never win
    """
    t = x_ref.shape[0]
    k = w_ref.shape[0]

    x = x_ref[...].astype(jnp.float32)                              # (T, D)

    # distance proxy: |w_k|^2 - 2 x.w_k  (|x|^2 is a per-row constant).
    # bf16 MXU matmul; the -2 is folded into the resident codebook copy.
    xw = jax.lax.dot_general(x_ref[...].astype(jnp.bfloat16), wq_ref[...],
                             (((1,), (1,)), ((), ())),
                             preferred_element_type=jnp.float32)    # (T, K)
    dist = w2_ref[...] + xw                                         # (T, K)

    # Fused min+argmin in a single cross-lane reduction: map f32 -> monotone
    # int32 key, clear its low bits and pack the lane index there, take min.
    # Ties (and near-ties within the cleared-bit quantum) resolve to the
    # lowest index, matching torch.argmin's first-occurrence behavior.
    bits = pltpu.bitcast(dist, jnp.int32)
    key = jnp.where(bits < 0, bits ^ 0x7FFFFFFF, bits)              # monotone
    lane = jax.lax.broadcasted_iota(jnp.int32, (t, k), 1)
    packed = (key & (~idx_mask)) | lane
    idx = jnp.min(packed, axis=1, keepdims=True) & idx_mask         # (T, 1)

    hit = lane == idx                                               # (T, K)
    enc = hit.astype(jnp.float32)
    # exact reconstruction: one-hot f32 @ f32 codebook == selected rows
    q = jnp.dot(enc, w_ref[...], preferred_element_type=jnp.float32)

    # per-tile partial SSE for the commitment loss (tail rows masked out)
    diff = q - x
    if n_total > n_valid:                        # compile-time branch
        rows = (pl.program_id(0) * t
                + jax.lax.broadcasted_iota(jnp.int32, (t, 1), 0))
        diff = jnp.where(rows < n_valid, diff, 0.0)
    sse = jnp.sum(diff * diff)

    # forward value of inputs + (quantized - inputs).detach() is just `quantized`
    q_ref[...] = q.astype(q_ref.dtype)
    enc_ref[...] = hit.astype(enc_ref.dtype)     # bf16 one-hot (exact 0/1)
    idx_ref[...] = idx
    sse_ref[...] = jnp.full((1, 8, 128), sse, jnp.float32)


def vector_quantizer_ema_forward(inputs, embedding_weight, commitment_cost,
                                 *, tile_rows=None, max_tile_rows=512,
                                 vmem_limit_bytes=32 * 1024 * 1024):
    """Eval-mode VectorQuantizerEMA.forward.

    inputs: (seqlen, bs, D) float; embedding_weight: (K, D) float.
    Returns (loss, quantized, encodings_flat, encoding_indices).
    max_tile_rows=512 keeps the footprint safe for v7x's 64 MiB VMEM; it can
    be raised (with vmem_limit_bytes) on v5e/v6e's 128 MiB parts.
    """
    seqlen, bs, d = inputs.shape
    num_code = embedding_weight.shape[0]
    n = seqlen * bs

    flat = inputs.reshape(n, d)                  # no extra dtype/pad pass on x
    w = embedding_weight.astype(jnp.float32)

    # --- codebook prep: pad K to a lane-dense multiple of 128 ---
    k_pad = _round_up(num_code, 128)
    w_pad = jnp.pad(w, ((0, k_pad - num_code), (0, 0)))
    wq = (-2.0 * w_pad).astype(jnp.bfloat16)     # distance-matmul operand
    w2 = jnp.pad(jnp.sum(w * w, axis=1), (0, k_pad - num_code),
                 constant_values=3.0e38)[None, :]   # padded codes never win

    idx_bits = max(1, (k_pad - 1).bit_length())
    idx_mask = (1 << idx_bits) - 1

    # --- row tiling ---
    if tile_rows is not None:
        tile = max(128, (int(tile_rows) // 128) * 128)
    else:
        tile = _select_tile_rows(n, max_tile_rows)
    num_tiles = -(-n // tile)
    n_total = num_tiles * tile

    kernel = functools.partial(_vq_kernel, n_valid=n, n_total=n_total,
                               idx_mask=idx_mask)

    itemsize = jnp.dtype(inputs.dtype).itemsize
    q_flat, enc_flat, idx_out, sse = pl.pallas_call(
        kernel,
        grid=(num_tiles,),
        in_specs=[
            pl.BlockSpec((tile, d), lambda i: (i, 0)),        # x tile
            pl.BlockSpec((k_pad, d), lambda i: (0, 0)),       # -2*w bf16 (resident)
            pl.BlockSpec((k_pad, d), lambda i: (0, 0)),       # w    f32  (resident)
            pl.BlockSpec((1, k_pad), lambda i: (0, 0)),       # |w|^2     (resident)
        ],
        out_specs=[
            pl.BlockSpec((tile, d), lambda i: (i, 0)),        # quantized
            pl.BlockSpec((tile, k_pad), lambda i: (i, 0)),    # one-hot (bf16)
            pl.BlockSpec((tile, 1), lambda i: (i, 0)),        # indices
            pl.BlockSpec((1, 8, 128), lambda i: (i, 0, 0)),   # per-tile SSE partial
        ],
        out_shape=[
            jax.ShapeDtypeStruct((n, d), inputs.dtype),
            jax.ShapeDtypeStruct((n, k_pad), jnp.bfloat16),
            jax.ShapeDtypeStruct((n, 1), jnp.int32),
            jax.ShapeDtypeStruct((num_tiles, 8, 128), jnp.float32),
        ],
        compiler_params=pltpu.CompilerParams(
            dimension_semantics=("parallel",),                # rows independent
            vmem_limit_bytes=int(vmem_limit_bytes)),
        cost_estimate=pl.CostEstimate(
            flops=4 * n_total * k_pad * d,                    # two (T,K,D) matmuls
            transcendentals=0,
            bytes_accessed=(itemsize * n_total * d            # x read
                            + itemsize * n_total * d          # q write
                            + 2 * n_total * k_pad             # enc write (bf16)
                            + 6 * k_pad * d + 4 * k_pad       # codebooks
                            + 4 * n_total)),                  # idx write
    )(flat, wq, w_pad, w2)

    # reduce per-tile partial SSE; divide by the *global* N*D
    sse_total = jnp.sum(sse[:, 0, 0])
    loss = jnp.float32(commitment_cost) * sse_total / jnp.float32(n * d)

    quantized = q_flat.reshape(seqlen, bs, d)
    encodings_flat = (enc_flat[:, :num_code].astype(jnp.float32)
                      .reshape(seqlen, bs, num_code))
    encoding_indices = idx_out                                 # (N, 1) int32
    return loss, quantized, encodings_flat, encoding_indices


if __name__ == "__main__":
    # Shapes implied by CMDEncoder: vq_vae = VectorQuantizerEMA(num_code=500,
    # codebook_dim=128, ...), fed z of shape (code_len=4, bs, 128).
    num_code = 500
    codebook_dim = 128
    code_len = 4
    bs = 64
    commitment_cost = 0.25

    key = jax.random.PRNGKey(0)
    k_w, k_x = jax.random.split(key)
    embedding_weight = jax.random.normal(
        k_w, (num_code, codebook_dim), dtype=jnp.float32)
    inputs = jax.random.normal(
        k_x, (code_len, bs, codebook_dim), dtype=jnp.float32)

    out = vector_quantizer_ema_forward(inputs, embedding_weight, commitment_cost)
    out = jax.block_until_ready(out)
    loss, quantized, encodings_flat, encoding_indices = out

    # ---- correctness checks (tolerant of bf16-distance near-tie flips) ----
    n = code_len * bs
    flat = inputs.reshape(n, codebook_dim)
    w = embedding_weight
    d_exact = (jnp.sum(flat ** 2, axis=1, keepdims=True)
               + jnp.sum(w ** 2, axis=1) - 2.0 * flat @ w.T)     # (N, K) f32
    ref_idx = jnp.argmin(d_exact, axis=1)
    ref_q = w[ref_idx].reshape(code_len, bs, codebook_dim)
    ref_loss = commitment_cost * jnp.mean((ref_q - inputs) ** 2)

    idx = encoding_indices[:, 0]
    d_best = jnp.min(d_exact, axis=1)
    d_chosen = jnp.take_along_axis(d_exact, encoding_indices, axis=1)[:, 0]
    # chosen codes must be (near-)optimal under the exact f32 metric; the bf16
    # distance matmul may only flip true near-ties.
    tol = 3e-2 * jnp.abs(d_best) + 0.5
    assert bool(jnp.all(d_chosen <= d_best + tol))
    assert float(jnp.mean((idx != ref_idx).astype(jnp.float32))) < 0.05

    # quantized rows are exactly the selected codebook rows (straight-through value)
    assert jnp.allclose(quantized.reshape(n, codebook_dim), w[idx],
                        rtol=1e-6, atol=1e-6)
    # encodings are one-hot and consistent with the indices
    enc2d = encodings_flat.reshape(n, num_code)
    assert jnp.array_equal(jnp.argmax(enc2d, axis=1), idx)
    assert jnp.allclose(jnp.sum(enc2d, axis=1), 1.0)
    # loss consistent with the kernel's own selection (tight) and with the
    # exact f32 reference (loose, tolerant of near-tie flips)
    own_loss = commitment_cost * jnp.mean((quantized - inputs) ** 2)
    assert jnp.allclose(loss, own_loss, rtol=1e-4, atol=1e-6)
    assert jnp.allclose(loss, ref_loss, rtol=2e-2, atol=1e-4)

    assert quantized.shape == (code_len, bs, codebook_dim)
    assert encodings_flat.shape == (code_len, bs, num_code)
    assert encoding_indices.shape == (n, 1)
    assert encoding_indices.dtype == jnp.int32

    print("KERNEL_OK")
</pallas_src>

<mosaic_0001>
module attributes {stable_mosaic.version = 11 : i64} {
  func.func @_vq_kernel(%arg0: i32, %arg1: memref<128x128xf32, #tpu.memory_space<vmem>>, %arg2: memref<512x128xbf16, #tpu.memory_space<vmem>>, %arg3: memref<512x128xf32, #tpu.memory_space<vmem>>, %arg4: memref<1x512xf32, #tpu.memory_space<vmem>>, %arg5: memref<128x128xf32, #tpu.memory_space<vmem>>, %arg6: memref<128x512xbf16, #tpu.memory_space<vmem>>, %arg7: memref<128x1xi32, #tpu.memory_space<vmem>>, %arg8: memref<1x8x128xf32, #tpu.memory_space<vmem>>) attributes {dimension_semantics = [#tpu.dimension_semantics<parallel>], iteration_bounds = array<i64: 2>, scalar_prefetch = 0 : i64, scratch_operands = 0 : i64, tpu.core_type = #tpu.core_type<tc>, window_params = [{transform_indices = @transform_0, window_bounds = array<i64: 128, 128>}, {pipeline_mode = #tpu.pipeline_mode<synchronous>, transform_indices = @transform_1, window_bounds = array<i64: 512, 128>}, {pipeline_mode = #tpu.pipeline_mode<synchronous>, transform_indices = @transform_2, window_bounds = array<i64: 512, 128>}, {pipeline_mode = #tpu.pipeline_mode<synchronous>, transform_indices = @transform_3, window_bounds = array<i64: 1, 512>}, {transform_indices = @transform_4, window_bounds = array<i64: 128, 128>}, {transform_indices = @transform_5, window_bounds = array<i64: 128, 512>}, {transform_indices = @transform_6, window_bounds = array<i64: 128, 1>}, {transform_indices = @transform_7, window_bounds = array<i64: 1, 8, 128>}]} {
    %c0 = arith.constant 0 : index
    %c0_0 = arith.constant 0 : index
    %0 = vector.load %arg1[%c0, %c0_0] : memref<128x128xf32, #tpu.memory_space<vmem>>, vector<128x128xf32>
    %c0_1 = arith.constant 0 : index
    %c0_2 = arith.constant 0 : index
    %1 = vector.load %arg1[%c0_1, %c0_2] : memref<128x128xf32, #tpu.memory_space<vmem>>, vector<128x128xf32>
    %2 = arith.truncf %1 : vector<128x128xf32> to vector<128x128xbf16>
    %c0_3 = arith.constant 0 : index
    %c0_4 = arith.constant 0 : index
    %3 = vector.load %arg2[%c0_3, %c0_4] : memref<512x128xbf16, #tpu.memory_space<vmem>>, vector<512x128xbf16>
    %cst = arith.constant dense<0.000000e+00> : vector<128x512xf32>
    %4 = tpu.matmul %2, %3, %cst {dimension_numbers = #tpu.dot_dimension_numbers<[1], [1], [0], [0], [0, 0, 1, 0], [], []>} : vector<128x128xbf16>, vector<512x128xbf16>, vector<128x512xf32> -> vector<128x512xf32>
    %c0_5 = arith.constant 0 : index
    %c0_6 = arith.constant 0 : index
    %5 = vector.load %arg4[%c0_5, %c0_6] : memref<1x512xf32, #tpu.memory_space<vmem>>, vector<1x512xf32>
    %6 = vector.broadcast %5 : vector<1x512xf32> to vector<128x512xf32>
    %7 = arith.addf %6, %4 : vector<128x512xf32>
    %8 = tpu.bitcast %7 : vector<128x512xf32> -> vector<128x512xi32>
    %c0_i32 = arith.constant 0 : i32
    %9 = vector.broadcast %c0_i32 : i32 to vector<128x512xi32>
    %10 = arith.cmpi slt, %8, %9 : vector<128x512xi32>
    %c2147483647_i32 = arith.constant 2147483647 : i32
    %11 = vector.broadcast %c2147483647_i32 : i32 to vector<128x512xi32>
    %12 = arith.xori %8, %11 : vector<128x512xi32>
    %13 = arith.select %10, %12, %8 : vector<128x512xi1>, vector<128x512xi32>
    %14 = tpu.iota {dimensions = array<i32: 1>} : vector<128x512xi32>
    %c-512_i32 = arith.constant -512 : i32
    %15 = vector.broadcast %c-512_i32 : i32 to vector<128x512xi32>
    %16 = arith.andi %13, %15 : vector<128x512xi32>
    %17 = arith.ori %16, %14 : vector<128x512xi32>
    %cst_7 = arith.constant dense<2147483647> : vector<128xi32>
    %18 = vector.multi_reduction <minsi>, %17, %cst_7 [1] : vector<128x512xi32> to vector<128xi32>
    %19 = vector.shape_cast %18 : vector<128xi32> to vector<128x1xi32>
    %c511_i32 = arith.constant 511 : i32
    %20 = vector.broadcast %c511_i32 : i32 to vector<128x1xi32>
    %21 = arith.andi %19, %20 : vector<128x1xi32>
    %22 = vector.broadcast %21 : vector<128x1xi32> to vector<128x512xi32>
    %23 = arith.cmpi eq, %14, %22 : vector<128x512xi32>
    %24 = arith.extui %23 : vector<128x512xi1> to vector<128x512xi32>
    %25 = arith.sitofp %24 : vector<128x512xi32> to vector<128x512xf32>
    %c0_8 = arith.constant 0 : index
    %c0_9 = arith.constant 0 : index
    %26 = vector.load %arg3[%c0_8, %c0_9] : memref<512x128xf32, #tpu.memory_space<vmem>>, vector<512x128xf32>
    %cst_10 = arith.constant dense<0.000000e+00> : vector<128x128xf32>
    %27 = tpu.matmul %25, %26, %cst_10 {dimension_numbers = #tpu.dot_dimension_numbers<[1], [0], [0], [1], [0, 0, 1, 1], [], []>} : vector<128x512xf32>, vector<512x128xf32>, vector<128x128xf32> -> vector<128x128xf32>
    %28 = arith.subf %27, %0 : vector<128x128xf32>
    %29 = arith.mulf %28, %28 : vector<128x128xf32>
    %30 = vector.shape_cast %29 : vector<128x128xf32> to vector<1x128x128xf32>
    %cst_11 = arith.constant dense<0.000000e+00> : vector<1xf32>
    %31 = vector.multi_reduction <add>, %30, %cst_11 [1, 2] : vector<1x128x128xf32> to vector<1xf32>
    %32 = vector.shape_cast %31 : vector<1xf32> to vector<1x1x1xf32>
    %33 = vector.extract %32[0, 0, 0] : f32 from vector<1x1x1xf32>
    %c0_12 = arith.constant 0 : index
    %c0_13 = arith.constant 0 : index
    %34 = vector.load %arg5[%c0_12, %c0_13] : memref<128x128xf32, #tpu.memory_space<vmem>>, vector<128x128xf32>
    tpu.vector_store %arg5[%c0_12, %c0_13], %27 {strides = array<i32>} : memref<128x128xf32, #tpu.memory_space<vmem>>, vector<128x128xf32>,
    %35 = arith.extui %23 : vector<128x512xi1> to vector<128x512xi32>
    %36 = arith.sitofp %35 : vector<128x512xi32> to vector<128x512xf32>
    %37 = arith.truncf %36 : vector<128x512xf32> to vector<128x512xbf16>
    %c0_14 = arith.constant 0 : index
    %c0_15 = arith.constant 0 : index
    %38 = vector.load %arg6[%c0_14, %c0_15] : memref<128x512xbf16, #tpu.memory_space<vmem>>, vector<128x512xbf16>
    tpu.vector_store %arg6[%c0_14, %c0_15], %37 {strides = array<i32>} : memref<128x512xbf16, #tpu.memory_space<vmem>>, vector<128x512xbf16>,
    %c0_16 = arith.constant 0 : index
    %c0_17 = arith.constant 0 : index
    %39 = vector.load %arg7[%c0_16, %c0_17] : memref<128x1xi32, #tpu.memory_space<vmem>>, vector<128x1xi32>
    tpu.vector_store %arg7[%c0_16, %c0_17], %21 {strides = array<i32>} : memref<128x1xi32, #tpu.memory_space<vmem>>, vector<128x1xi32>,
    %40 = vector.broadcast %33 : f32 to vector<1x8x128xf32>
    %c0_18 = arith.constant 0 : index
    %c0_19 = arith.constant 0 : index
    %c0_20 = arith.constant 0 : index
    %41 = vector.load %arg8[%c0_18, %c0_19, %c0_20] : memref<1x8x128xf32, #tpu.memory_space<vmem>>, vector<1x8x128xf32>
    tpu.vector_store %arg8[%c0_18, %c0_19, %c0_20], %40 {strides = array<i32>} : memref<1x8x128xf32, #tpu.memory_space<vmem>>, vector<1x8x128xf32>,
    return
  }
  func.func @transform_0(%arg0: i32) -> (i32, i32) {
    %c0_i32 = arith.constant 0 : i32
    %c0_i32_0 = arith.constant 0 : i32
    return %arg0, %c0_i32 : i32, i32
  }
  func.func @transform_1(%arg0: i32) -> (i32, i32) {
    %c0_i32 = arith.constant 0 : i32
    %c0_i32_0 = arith.constant 0 : i32
    %c0_i32_1 = arith.constant 0 : i32
    return %c0_i32, %c0_i32_0 : i32, i32
  }
  func.func @transform_2(%arg0: i32) -> (i32, i32) {
    %c0_i32 = arith.constant 0 : i32
    %c0_i32_0 = arith.constant 0 : i32
    %c0_i32_1 = arith.constant 0 : i32
    return %c0_i32, %c0_i32_0 : i32, i32
  }
  func.func @transform_3(%arg0: i32) -> (i32, i32) {
    %c0_i32 = arith.constant 0 : i32
    %c0_i32_0 = arith.constant 0 : i32
    %c0_i32_1 = arith.constant 0 : i32
    return %c0_i32, %c0_i32_0 : i32, i32
  }
  func.func @transform_4(%arg0: i32) -> (i32, i32) {
    %c0_i32 = arith.constant 0 : i32
    %c0_i32_0 = arith.constant 0 : i32
    return %arg0, %c0_i32 : i32, i32
  }
  func.func @transform_5(%arg0: i32) -> (i32, i32) {
    %c0_i32 = arith.constant 0 : i32
    %c0_i32_0 = arith.constant 0 : i32
    return %arg0, %c0_i32 : i32, i32
  }
  func.func @transform_6(%arg0: i32) -> (i32, i32) {
    %c0_i32 = arith.constant 0 : i32
    %c0_i32_0 = arith.constant 0 : i32
    return %arg0, %c0_i32 : i32, i32
  }
  func.func @transform_7(%arg0: i32) -> (i32, i32, i32) {
    %c0_i32 = arith.constant 0 : i32
    %c0_i32_0 = arith.constant 0 : i32
    %c0_i32_1 = arith.constant 0 : i32
    return %arg0, %c0_i32, %c0_i32_0 : i32, i32, i32
  }
}

</mosaic_0001>

<bundles_post_ra>
// kernel: tpu_custom_call.1
= control target key start
LH: loop header
LB: loop body
LE: loop exit
PB: predicated region body
PF: predicated region fallthrough
CT: control target
= control target key end

     0   :  { %s5143_s0 = inlined_call_operand.hbm [shape: f32[256,128], index: 0, kind: input, shape index: {}]   ;;  %s5144_s1 = inlined_call_operand.hbm [shape: bf16[512,128], index: 1, kind: input, shape index: {}]   ;;  %s5145_s2 = inlined_call_operand.hbm [shape: f32[512,128], index: 2, kind: input, shape index: {}]   ;;  %s5146_s3 = inlined_call_operand.vmem [shape: f32[1,512], index: 3, kind: input, shape index: {}]   ;;  %s5147_s4 = inlined_call_operand.hbm [shape: f32[256,128], index: 4, kind: output, shape index: {0}]   ;;  %s5148_s5 = inlined_call_operand.hbm [shape: bf16[256,512], index: 5, kind: output, shape index: {1}]   ;;  %s5149_s6 = inlined_call_operand.vmem [shape: s32[256,1], index: 6, kind: output, shape index: {2}]   ;;  %s5150_s7 = inlined_call_operand.hbm [shape: f32[2,8,128], index: 7, kind: output, shape index: {3}]  }
   0x1   :  { %5163 = sst [smem:[#allocation29_spill]] %s5143_s0 }
   0x2   :  { %13 = vsyncpa [#allocation3], 0 }
   0x3   :  { %15 = vsyncpa [#allocation3 + $0x1], 0 }
   0x4   :  { %16 = vsyncpa [#allocation6], 0 }
   0x5   :  { %17 = vsyncpa [#allocation4], 0 }
   0x6   :  { %19 = vsyncpa [#allocation4 + $0x1], 0 }
   0x7   :  { %20 = vsyncpa [#allocation10], 0 }
   0x8   :  { %22 = vsyncpa [#allocation10 + $0x1], 0  ;;  %s3735_s24 = smov 0   ;;  %s3737_s25 = smov 0  }
   0x9   :  { %s3739_s26 = smov 0   ;;  %s3741_s27 = smov 0  }
   0xa LB: > { %s3756_s28 = sadd.s32 4294967295, %s3677_s27   ;;  %s5152_s29 = sadd.s32 4294967294, %s3677_s27   ;;  %s3677_s27 = sphi %s3741_s27, %s5216_s27   ;;  %s3673_s26 = sphi %s3739_s26, %s5215_s26   ;;  %s3669_s25 = sphi %s3737_s25, %s5214_s25   ;;  %s3665_s24 = sphi %s3735_s24, %s5213_s24  }
   0xb   : > { %p48_p0 = scmp.ne.s32.totalorder %s3669_s25, %s3665_s24  ;;  %p5151_p1 = scmp.eq.s32.totalorder %s3756_s28, 0 }
   0xc   : > { %p141_p3 = scmp.eq.s32.totalorder %s5152_s29, 1  ;;  %p2781_p5 = scmp.ge.s32.totalorder %s3677_s27, 1 }
   0xd   : > { %p3767_p4 = por %p5151_p1, %p48_p0  ;;  %p226_p7 = scmp.lt.s32.totalorder %s3677_s27, 3 }
   0xe   : > { %p3772_p6 = por %p141_p3, %p48_p0  ;;  %s3679_s10 = smov [#allocation5]  }
   0xf   : > { %s5164_s30 = scalar_select %p3767_p4, 1, 0 }
  0x10   : > { %s5165_s8 = scalar_select %p3772_p6, 1, 0 }
  0x11   : > { %p3777_p8 = pnand %p2781_p5, %p226_p7  ;;  %s238_s11 = sshll.u32 %s3679_s10, 4  ;;  %s3781_s11 = int_to_ptr.vmem [resolvable:$true] %s238_s11 }
  0x12   : > { %s3680_s13 = smov [#allocation7]   ;;  %s3461_s17 = scalar_lea.hbm %s5144_s1, 4096 }
  0x13   : > { %p3342_p9 = pneg %p3777_p8  ;;  %s251_s14 = sshll.u32 %s3680_s13, 4  ;;  %s3792_s14 = int_to_ptr.vmem [resolvable:$true] %s251_s14 }
  0x14   : > { %p3462_p12 = scmp.ne.s32.totalorder %s5144_s1, %s3461_s17  ;;  %p3468_p5 = scmp.lt.u32.totalorder %s3461_s17, %s5144_s1 }
  0x15   : > { %p3788_p11 = pnand %p3342_p9, %p5151_p1 }
  0x17   : > { %p3463_p13 = pneg %p3788_p11 }
  0x19   : > { %p3464_p0 = pnand %p3463_p13, %p3462_p12 }
  0x1b   : > { %p3465_p3 = pneg %p3464_p0 }
  0x1d   : > { %p3470_p7 = pnand %p3468_p5, %p3465_p3 }
  0x1f   : > { %3473 = shalt.err (!%p3470_p7)
}
  0x20   : > { %s3474_s22 = scalar_lea.vmem %s3781_s11, 4096  ;;  %p3482_p2 = scmp.lt.s32.totalorder %s3781_s11, %s3781_s11 }
  0x21   : > { %p3475_p9 = scmp.ne.s32.totalorder %s3781_s11, %s3474_s22  ;;  %p3483_p12 = scmp.lt.s32.totalorder %s3474_s22, %s3474_s22 }
  0x23   : > { %p3477_p10 = pnand %p3475_p9, %p3463_p13  ;;  %p3484_p0 = por %p3483_p12, %p3482_p2 }
  0x25   : > { %p3478_p1 = pneg %p3477_p10 }
  0x27   : > { %p3485_p6 = pnand %p3484_p0, %p3478_p1 }
  0x29   : > { %3488 = shalt.err (!%p3485_p6)
}
  0x2a   : > { %s3681_s23 = smov 64   ;;  %s3682_s10 = smov 4  }
  0x2b   : > { %3345 = dma.hbm_to_vmem [thread:$0]  (!%p3788_p11), %s5144_s1, 4096, %s3781_s11, [#allocation6], %s3681_s23, %s3681_s23, %s3682_s10  }
  0x2c   : > { %s3489_s18 = scalar_lea.hbm %s5145_s2, 8192 }
  0x2d   : > { %p3490_p2 = scmp.ne.s32.totalorder %s5145_s2, %s3489_s18  ;;  %p3496_p10 = scmp.lt.u32.totalorder %s3489_s18, %s5145_s2 }
  0x2f   : > { %p3492_p1 = pnand %p3490_p2, %p3463_p13 }
  0x31   : > { %p3493_p6 = pneg %p3492_p1 }
  0x33   : > { %p3498_p3 = pnand %p3496_p10, %p3493_p6 }
  0x35   : > { %3501 = shalt.err (!%p3498_p3)
}
  0x36   : > { %s3502_s11 = scalar_lea.vmem %s3792_s14, 8192  ;;  %p3510_p12 = scmp.lt.s32.totalorder %s3792_s14, %s3792_s14 }
  0x37   : > { %p3503_p5 = scmp.ne.s32.totalorder %s3792_s14, %s3502_s11  ;;  %p3511_p0 = scmp.lt.s32.totalorder %s3502_s11, %s3502_s11 }
  0x39   : > { %p3505_p7 = pnand %p3503_p5, %p3463_p13  ;;  %p3512_p2 = por %p3511_p0, %p3510_p12 }
  0x3b   : > { %p3506_p9 = pneg %p3505_p7 }
  0x3d   : > { %p3513_p1 = pnand %p3512_p2, %p3506_p9 }
  0x3f   : > { %3516 = shalt.err (!%p3513_p1)
}
  0x40   : > { %s5153_s23 = smov 128   ;;  %s3684_s10 = smov 8  }
  0x41   : > { %3348 = dma.hbm_to_vmem [thread:$0]  (!%p3788_p11), %s5145_s2, 8192, %s3792_s14, [#allocation6], %s5153_s23, %s5153_s23, %s3684_s10  }
  0x42   : > { %s3850_s16 = sadd.s32 1, %s3677_s27   ;;  %s35_s18 = sadd.s32 1, %s3673_s26 }
  0x43   : > { %s32_s17 = ssub.s32 %s3677_s27, %s3850_s16  ;;  %p42_p6 = scmp.ne.s32.totalorder %s3673_s26, %s3669_s25 }
  0x44   : > { %p33_p13 = scmp.eq.s32.totalorder %s32_s17, 0  ;;  %p43_p10 = scmp.eq.s32.totalorder %s3677_s27, 0 }
  0x45   : > { %p5168_p5 = scmp.eq.s32.totalorder %s3756_s28, 1  ;;  %p3365_p9 = scmp.lt.s32.totalorder %s3677_s27, 2 }
  0x46   : > { %s3859_s19 = scalar_select %p33_p13, %s3673_s26, %s35_s18  }
  0x47   : > { %p44_p3 = por %p43_p10, %p42_p6  ;;  %p3863_p7 = por %p5168_p5, %p42_p6 }
  0x48   : > { %s268_s20 = sand.u32 1, %s3673_s26   ;;  %s3000_s14 = sshll.u32 %s3677_s27, 11 }
  0x49   : > { %s5169_s12 = scalar_select %p3863_p7, 1, 0 }
  0x4a   : > { %s2785_s21 = sshll.u32 %s268_s20, 7  ;;  %s5170_s0 = sld [smem:[#allocation29_spill]] }
  0x4b   : > { %s272_s15 = scalar_lea.vmem [#allocation2], %s2785_s21  ;;  %p3877_p11 = pnand %p3365_p9, %p44_p3 }
  0x4c   : > { %s279_s17 = sshll.u32 %s272_s15, 4  ;;  %s3881_s29 = scalar_lea.sflag [#allocation3], %s268_s20  ;;  %s3875_s17 = int_to_ptr.vmem [resolvable:$true] %s279_s17 }
  0x4d   : > { %p3519_p0 = pneg %p3877_p11 }
  0x50   : > { %s3873_s13 = scalar_lea.hbm %s5170_s0, %s3000_s14  ;;  %s3522_s22 = scalar_lea.hbm %s5170_s0, 4096 }
  0x51   : > { %s3517_s23 = scalar_lea.hbm %s3873_s13, 2048  ;;  %p3523_p13 = scmp.lt.u32.totalorder %s3873_s13, %s5170_s0 }
  0x52   : > { %p3518_p12 = scmp.ne.s32.totalorder %s3873_s13, %s3517_s23  ;;  %p3524_p6 = scmp.lt.u32.totalorder %s3522_s22, %s3517_s23 }
  0x53   : > { %p3526_p3 = scmp.lt.u32.totalorder %s3517_s23, %s3873_s13 }
  0x54   : > { %p3520_p2 = pnand %p3519_p0, %p3518_p12  ;;  %p3525_p10 = por %p3524_p6, %p3523_p13 }
  0x56   : > { %p3521_p1 = pneg %p3520_p2  ;;  %p3527_p5 = por %p3526_p3, %p3525_p10 }
  0x58   : > { %p3528_p9 = pnand %p3527_p5, %p3521_p1 }
  0x5a   : > { %3531 = shalt.err (!%p3528_p9)
}
  0x5b   : > { %s3532_s20 = scalar_lea.vmem %s3875_s17, 2048  ;;  %s3685_s21 = smov [#allocation2]  }
  0x5c   : > { %p3533_p12 = scmp.ne.s32.totalorder %s3875_s17, %s3532_s20  ;;  %s3537_s14 = sshll.u32 %s3685_s21, 4  ;;  %s3538_s14 = int_to_ptr.vmem [resolvable:$false] %s3537_s14 }
  0x5d   : > { %s3539_s11 = scalar_lea.vmem %s3538_s14, 4096  ;;  %p3540_p4 = scmp.lt.s32.totalorder %s3875_s17, %s3538_s14 }
  0x5e   : > { %p3535_p2 = pnand %p3533_p12, %p3519_p0  ;;  %p3541_p13 = scmp.lt.s32.totalorder %s3539_s11, %s3532_s20 }
  0x60   : > { %p3536_p7 = pneg %p3535_p2  ;;  %p3542_p6 = por %p3541_p13, %p3540_p4 }
  0x62   : > { %p3543_p10 = pnand %p3542_p6, %p3536_p7 }
  0x64   : > { %3546 = shalt.err (!%p3543_p10)
}
  0x65   : > { %s5172_s23 = smov 128   ;;  %291 = sbr.rel (%p3777_p8) target bundleno = 1274 (0x4fa), region = 36 }
  0x66   : > { %3352 = dma.hbm_to_vmem [thread:$0]  (!%p3877_p11), %s3873_s13, 2048, %s3875_s17, %s3881_s29, %s5172_s23, %s5172_s23, %s3684_s10  }
  0x6c   : > { %s3915_s22 = sand.u32 1, %s3669_s25   ;;  %p5173_p4 = scmp.ne.s32.totalorder %s5164_s30, 0 }
  0x6d   : > { %s2789_s15 = sshll.u32 %s3915_s22, 7  ;;  %s294_s20 = scalar_lea.sflag [#allocation3], %s3915_s22 }
  0x6e   : > { %s3921_s18 = scalar_lea.vmem [#allocation2], %s2789_s15 }
  0x6f   : > { %3648 = dma.done.wait (%p5173_p4), %s294_s20, 2048  }
  0x70   : > { %3650 = vsyncadd (%p5173_p4), %s294_s20, 4294965248  ;;  %p5174_p7 = scmp.eq.s32.totalorder %s3756_s28, 0 }
  0x72   : > { %3652 = dma.done.wait (%p5174_p7), [#allocation6], 12288   ;;  %p5175_p8 = pmov %p5174_p7 }
  0x73   : > { %v3413_v0 = vld [vmem:[#allocation5 + $0x40] sm:$0xff]   ;;  %v3417_v4 = vld [vmem:[#allocation5 + $0x48] sm:$0xff]   ;;  %v3421_v8 = vld [vmem:[#allocation5 + $0x50] sm:$0xff]   ;;  %v869_v56 = vlaneseq  ;;  %s2795_s9 = sshll.u32 %s3756_s28, 4  ;;  %s2793_s14 = sshll.u32 %s3915_s22, 8 }
  0x74   : > { %3654 = vsyncadd (%p5175_p8), [#allocation6], 4294955008  ;;  %v3414_v1 = vld [vmem:[#allocation5 + $0xc0] sm:$0xff]   ;;  %3036 = vmatprep.subr.bf16.mxu0 %v3413_v0  ;;  %v3418_v5 = vld [vmem:[#allocation5 + $0xc8] sm:$0xff]   ;;  %p355_p11 = scmp.lt.s32.totalorder %s2795_s9, 31  ;;  %s4704_s11 = scalar_lea.vmem [#allocation9], %s2793_s14 }
  0x75   : > { %v3415_v2 = vld [vmem:[#allocation5] sm:$0xff]   ;;  %3068 = vmatprep.subr.bf16.mxu1 %v3414_v1  ;;  %v3419_v6 = vld [vmem:[#allocation5 + $0x8] sm:$0xff]   ;;  %v3422_v9 = vld [vmem:[#allocation5 + $0xd0] sm:$0xff]   ;;  %v870_v57 = vshrl.u32 %v869_v56, 7  ;;  %v3952_v0 = vand.u32 127, %v869_v56  ;;  %s4991_s23 = scalar_lea.vmem [#allocation8], %s2789_s15 }
  0x76   : > { %v3416_v3 = vld [vmem:[#allocation5 + $0x80] sm:$0xff]   ;;  %3037 = vmatpush3.bf16.xpose.msra.mxu0 %v3415_v2  ;;  %v3420_v7 = vld [vmem:[#allocation5 + $0x88] sm:$0xff]   ;;  %v3423_v10 = vld [vmem:[#allocation5 + $0x10] sm:$0xff]   ;;  %s5218_s9 = smov (!%p355_p11, %s2795_s9), 31  ;;  %s2544_s15 = sand.u32 1, %s3756_s28  }
  0x77   : > { %3069 = vmatpush3.bf16.xpose.msra.mxu1 %v3416_v3  ;;  %3038 = vmatprep.subr.bf16.mxu0 %v3417_v4  ;;  %v3424_v11 = vld [vmem:[#allocation5 + $0x90] sm:$0xff]   ;;  %v3425_v12 = vld [vmem:[#allocation5 + $0x58] sm:$0xff]   ;;  %v3429_v16 = vld [vmem:[#allocation5 + $0x60] sm:$0xff]   ;;  %v871_v58 = vsub.s32 0, %v870_v57  ;;  %v879_v60 = vsub.s32 2, %v870_v57  ;;  %v875_v61 = vsub.s32 1, %v870_v57 }
  0x78   : > { %3070 = vmatprep.subr.bf16.mxu1 %v3418_v5  ;;  %v3426_v13 = vld [vmem:[#allocation5 + $0xd8] sm:$0xff]   ;;  %v3430_v17 = vld [vmem:[#allocation5 + $0xe0] sm:$0xff]   ;;  %v362_v20 = vld [vmem:[%s3921_s18 + $0x8] sm:$0xff]  ;;  %v883_v62 = vsub.s32 3, %v870_v57  ;;  %s2796_s10 = sshll.u32 %s5218_s9, 3  ;;  %s3035_s20 = sshll.u32 %s3756_s28, 12 }
  0x79   : > { %v3427_v14 = vld [vmem:[#allocation5 + $0x18] sm:$0xff]   ;;  %v3431_v18 = vld [vmem:[#allocation5 + $0x20] sm:$0xff]   ;;  %v3433_v22 = vld [vmem:[#allocation5 + $0x68] sm:$0xff]   ;;  %s4687_s21 = scalar_lea.vmem %s5149_s6, %s2796_s10  ;;  %s2585_s29 = sshll.u32 %s4704_s11, 4  ;;  %s5033_s29 = int_to_ptr.vmem [resolvable:$true] %s2585_s29 }
  0x7a   : > { %v3428_v15 = vld [vmem:[#allocation5 + $0x98] sm:$0xff]   ;;  %v361_v19 = vld [vmem:[%s3921_s18] sm:$0xff]  ;;  %v3434_v24 = vld [vmem:[#allocation5 + $0xe8] sm:$0xff]   ;;  %s5031_s10 = scalar_lea.hbm %s5148_s5, %s3035_s20  ;;  %s5035_s13 = scalar_lea.sflag [#allocation10], %s2544_s15 }
  0x7b   : > { %v3432_v21 = vld [vmem:[#allocation5 + $0xa0] sm:$0xff]   ;;  %v377_v23 = vpack.c.bf16 %v362_v20, %v361_v19  ;;  %v3435_v25 = vld [vmem:[#allocation5 + $0x28] sm:$0xff]   ;;  %v3437_v27 = vld [vmem:[#allocation5 + $0x70] sm:$0xff]   ;;  %p5209_p1 = scmp.ne.s32.totalorder %s5169_s12, 0  ;;  %s3688_s17 = smov [#allocation9]  }
  0x7c   : > { %v3436_v26 = vld [vmem:[#allocation5 + $0xa8] sm:$0xff]   ;;  %v3438_v28 = vld [vmem:[#allocation5 + $0xf0] sm:$0xff]   ;;  %v3441_v31 = vld [vmem:[#allocation5 + $0x78] sm:$0xff]  }
  0x7d   : > { %3052 = vmatprep.mubr.bf16.mxu0 %v377_v23  ;;  %3084 = vmatprep.mubr.bf16.mxu1 %v377_v23  ;;  %v3439_v29 = vld [vmem:[#allocation5 + $0x30] sm:$0xff]   ;;  %v3442_v32 = vld [vmem:[#allocation5 + $0xf8] sm:$0xff]   ;;  %v365_v38 = vld [vmem:[%s3921_s18 + $0x20] sm:$0xff] }
  0x7e   : > { %3039 = vmatpush3.bf16.xpose.msra.mxu0 %v3419_v6  ;;  %v3440_v30 = vld [vmem:[#allocation5 + $0xb0] sm:$0xff]   ;;  %v3443_v33 = vld [vmem:[#allocation5 + $0x38] sm:$0xff]   ;;  %v366_v39 = vld [vmem:[%s3921_s18 + $0x28] sm:$0xff] }
  0x7f   : > { %3071 = vmatpush3.bf16.xpose.msra.mxu1 %v3420_v7  ;;  %3040 = vmatprep.subr.bf16.mxu0 %v3421_v8  ;;  %v3444_v34 = vld [vmem:[#allocation5 + $0xb8] sm:$0xff]   ;;  %v363_v35 = vld [vmem:[%s3921_s18 + $0x10] sm:$0xff]  ;;  %v379_v40 = vpack.c.bf16 %v366_v39, %v365_v38  ;;  %v369_v44 = vld [vmem:[%s3921_s18 + $0x40] sm:$0xff] }
  0x80   : > { %3072 = vmatprep.subr.bf16.mxu1 %v3422_v9  ;;  %v364_v36 = vld [vmem:[%s3921_s18 + $0x18] sm:$0xff]  ;;  %v367_v41 = vld [vmem:[%s3921_s18 + $0x30] sm:$0xff]  ;;  %v370_v45 = vld [vmem:[%s3921_s18 + $0x48] sm:$0xff]  ;;  %v3963_v9 = vadd.s32 256, %v3952_v0 }
  0x81   : > { %v378_v37 = vpack.c.bf16 %v364_v36, %v363_v35  ;;  %v368_v42 = vld [vmem:[%s3921_s18 + $0x38] sm:$0xff]  ;;  %v381_v46 = vpack.c.bf16 %v370_v45, %v369_v44  ;;  %v371_v47 = vld [vmem:[%s3921_s18 + $0x50] sm:$0xff]  ;;  %v373_v50 = vld [vmem:[%s3921_s18 + $0x60] sm:$0xff] }
  0x82   : > { %v380_v43 = vpack.c.bf16 %v368_v42, %v367_v41  ;;  %v372_v48 = vld [vmem:[%s3921_s18 + $0x58] sm:$0xff]  ;;  %v374_v51 = vld [vmem:[%s3921_s18 + $0x68] sm:$0xff]  ;;  %v375_v53 = vld [vmem:[%s3921_s18 + $0x70] sm:$0xff] }
  0x83   : > { %v382_v49 = vpack.c.bf16 %v372_v48, %v371_v47  ;;  %v383_v52 = vpack.c.bf16 %v374_v51, %v373_v50  ;;  %v376_v54 = vld [vmem:[%s3921_s18 + $0x78] sm:$0xff]  ;;  %v867_v59 = vld [vmem:[%s5146_s3] sm:$0xf] }
  0x84   : > { %v384_v55 = vpack.c.bf16 %v376_v54, %v375_v53  ;;  %v3950_v63 = vrot.slane %v867_v59, %v871_v58  ;;  %v3954_v1 = vrot.slane %v867_v59, %v879_v60  ;;  %v3956_v2 = vrot.slane %v867_v59, %v875_v61 }
  0x85   : > { %v3958_v3 = vrot.slane %v867_v59, %v883_v62 }
  0x86   : > { %3041 = vmatpush3.bf16.xpose.msra.mxu0 %v3423_v10 }
  0x87   : > { %3073 = vmatpush3.bf16.xpose.msra.mxu1 %v3424_v11  ;;  %3042 = vmatprep.subr.bf16.mxu0 %v3425_v12  ;;  %v3967_v11 = vadd.s32 128, %v3952_v0 }
  0x88   : > { %3074 = vmatprep.subr.bf16.mxu1 %v3426_v13 }
  0x8e   : > { %3043 = vmatpush3.bf16.xpose.msra.mxu0 %v3427_v14 }
  0x8f   : > { %3075 = vmatpush3.bf16.xpose.msra.mxu1 %v3428_v15  ;;  %3044 = vmatprep.subr.bf16.mxu0 %v3429_v16 }
  0x90   : > { %3076 = vmatprep.subr.bf16.mxu1 %v3430_v17 }
  0x96   : > { %3045 = vmatpush3.bf16.xpose.msra.mxu0 %v3431_v18 }
  0x97   : > { %3077 = vmatpush3.bf16.xpose.msra.mxu1 %v3432_v21  ;;  %3046 = vmatprep.subr.bf16.mxu0 %v3433_v22 }
  0x98   : > { %3078 = vmatprep.subr.bf16.mxu1 %v3434_v24 }
  0x9e   : > { %3047 = vmatpush3.bf16.xpose.msra.mxu0 %v3435_v25 }
  0x9f   : > { %3079 = vmatpush3.bf16.xpose.msra.mxu1 %v3436_v26  ;;  %3048 = vmatprep.subr.bf16.mxu0 %v3437_v27 }
  0xa0   : > { %3080 = vmatprep.subr.bf16.mxu1 %v3438_v28 }
  0xa6   : > { %3049 = vmatpush3.bf16.xpose.msra.mxu0 %v3439_v29 }
  0xa7   : > { %3081 = vmatpush3.bf16.xpose.msra.mxu1 %v3440_v30  ;;  %3050 = vmatprep.subr.bf16.mxu0 %v3441_v31  ;;  %v3975_v31 = vadd.s32 384, %v3952_v0 }
  0xa8   : > { %3082 = vmatprep.subr.bf16.mxu1 %v3442_v32 }
  0xae   : > { %3051 = vmatpush3.bf16.xpose.msra.mxu0 %v3443_v33 }
  0xaf   : > { %3083 = vmatpush3.bf16.xpose.msra.mxu1 %v3444_v34 }
  0xb5   : > { %3053 = vmatmul.mubr.bf16.vlgmr.msra.gmra.mrb[0].mxu0 %v377_v23 }
  0xb6   : > { %3085 = vmatmul.mubr.bf16.vlgmr.msra.gmra.mrb[0].mxu1 %v377_v23  ;;  %3054 = vmatprep.mubr.bf16.mxu0 %v378_v37 }
  0xb7   : > { %3086 = vmatprep.mubr.bf16.mxu1 %v378_v37 }
  0xbd   : > { %3055 = vmatmul.mubr.bf16.gmra.mrb[4].mxu0 %v378_v37 }
  0xbe   : > { %3087 = vmatmul.mubr.bf16.gmra.mrb[4].mxu1 %v378_v37  ;;  %3056 = vmatprep.mubr.bf16.mxu0 %v379_v40 }
  0xbf   : > { %3088 = vmatprep.mubr.bf16.mxu1 %v379_v40 }
  0xc5   : > { %3057 = vmatmul.mubr.bf16.gmra.mrb[8].mxu0 %v379_v40 }
  0xc6   : > { %3089 = vmatmul.mubr.bf16.gmra.mrb[8].mxu1 %v379_v40  ;;  %3058 = vmatprep.mubr.bf16.mxu0 %v380_v43 }
  0xc7   : > { %3090 = vmatprep.mubr.bf16.mxu1 %v380_v43 }
  0xcd   : > { %3059 = vmatmul.mubr.bf16.gmra.mrb[12].mxu0 %v380_v43 }
  0xce   : > { %3091 = vmatmul.mubr.bf16.gmra.mrb[12].mxu1 %v380_v43  ;;  %3060 = vmatprep.mubr.bf16.mxu0 %v381_v46 }
  0xcf   : > { %3092 = vmatprep.mubr.bf16.mxu1 %v381_v46 }
  0xd5   : > { %3061 = vmatmul.mubr.bf16.gmra.mrb[16].mxu0 %v381_v46 }
  0xd6   : > { %3093 = vmatmul.mubr.bf16.gmra.mrb[16].mxu1 %v381_v46  ;;  %3062 = vmatprep.mubr.bf16.mxu0 %v382_v49 }
  0xd7   : > { %3094 = vmatprep.mubr.bf16.mxu1 %v382_v49 }
  0xdd   : > { %3063 = vmatmul.mubr.bf16.gmra.mrb[20].mxu0 %v382_v49 }
  0xde   : > { %3095 = vmatmul.mubr.bf16.gmra.mrb[20].mxu1 %v382_v49  ;;  %3064 = vmatprep.mubr.bf16.mxu0 %v383_v52 }
  0xdf   : > { %3096 = vmatprep.mubr.bf16.mxu1 %v383_v52 }
  0xe5   : > { %3065 = vmatmul.mubr.bf16.gmra.mrb[24].mxu0 %v383_v52 }
  0xe6   : > { %3097 = vmatmul.mubr.bf16.gmra.mrb[24].mxu1 %v383_v52  ;;  %3066 = vmatprep.mubr.bf16.mxu0 %v384_v55 }
  0xe7   : > { %3098 = vmatprep.mubr.bf16.mxu1 %v384_v55 }
  0xed   : > { %3067 = vmatmul.mubr.bf16.gmra.mrb[28].mxu0 %v384_v55 }
  0xee   : > { %3099 = vmatmul.mubr.bf16.gmra.mrb[28].mxu1 %v384_v55 }
 0x188   : > { %v675_v4 = vpop.f32.mrb[0].mxu0 }
 0x189   : > { %v889_v5 = vadd.f32 %v3950_v63, %v675_v4  ;;  %v788_v6 = vpop.f32.mrb[0].mxu1  ;;  %v677_v7 = vpop.f32.mrb[1].mxu0 }
 0x18a   : > { %v891_v8 = vadd.f32 %v3954_v1, %v788_v6  ;;  %v890_v10 = vadd.f32 %v3956_v2, %v677_v7  ;;  %v790_v12 = vpop.f32.mrb[1].mxu1  ;;  %v679_v13 = vpop.f32.mrb[2].mxu0 }
 0x18b   : > { %vm1017_vm0 = vcmp.lt.s32.totalorder %v889_v5, 0  ;;  %v1081_v14 = vxor.u32 2147483647, %v889_v5  ;;  %v892_v15 = vadd.f32 %v3958_v3, %v790_v12  ;;  %v893_v16 = vadd.f32 %v3950_v63, %v679_v13  ;;  %v792_v17 = vpop.f32.mrb[2].mxu1  ;;  %v681_v18 = vpop.f32.mrb[3].mxu0 }
 0x18c   : > { %vm1019_vm1 = vcmp.lt.s32.totalorder %v891_v8, 0  ;;  %v1083_v19 = vxor.u32 2147483647, %v891_v8  ;;  %vm1018_vm2 = vcmp.lt.s32.totalorder %v890_v10, 0  ;;  %v1082_v20 = vxor.u32 2147483647, %v890_v10 }
 0x18d   : > { %v1145_v21 = vsel %vm1017_vm0, %v1081_v14, %v889_v5  ;;  %vm1020_vm3 = vcmp.lt.s32.totalorder %v892_v15, 0  ;;  %v1084_v22 = vxor.u32 2147483647, %v892_v15  ;;  %vm1021_vm4 = vcmp.lt.s32.totalorder %v893_v16, 0  ;;  %v794_v23 = vpop.f32.mrb[3].mxu1 }
 0x18e   : > { %v1214_v24 = vand.u32 4294966784, %v1145_v21  ;;  %v1147_v25 = vsel %vm1019_vm1, %v1083_v19, %v891_v8  ;;  %v1146_v26 = vsel %vm1018_vm2, %v1082_v20, %v890_v10  ;;  %v1085_v27 = vxor.u32 2147483647, %v893_v16 }
 0x18f   : > { %v1215_v28 = vand.u32 4294966784, %v1146_v26  ;;  %v3971_v29 = vsel %vm1020_vm3, %v1084_v22, %v892_v15  ;;  %v895_v30 = vadd.f32 %v3954_v1, %v792_v17  ;;  %v1216_v33 = vand.u32 4294966784, %v1147_v25 }
 0x190   : > { %v3978_v32 = vor.u32 %v1214_v24, %v3952_v0  ;;  %v1149_v34 = vsel %vm1021_vm4, %v1085_v27, %v893_v16  ;;  %v894_v35 = vadd.f32 %v3956_v2, %v681_v18  ;;  %v685_v36 = vpop.f32.mrb[4].mxu0  ;;  %v1217_v38 = vand.u32 4294966784, %v3971_v29 }
 0x191   : > { %v3982_v37 = vor.u32 %v1215_v28, %v3967_v11  ;;  %v1218_v39 = vand.u32 4294966784, %v1149_v34  ;;  %vm1023_vm5 = vcmp.lt.s32.totalorder %v895_v30, 0  ;;  %v798_v40 = vpop.f32.mrb[4].mxu1  ;;  %v687_v41 = vpop.f32.mrb[5].mxu0  ;;  %v1087_v42 = vxor.u32 2147483647, %v895_v30 }
 0x192   : > { %vm1022_vm6 = vcmp.lt.s32.totalorder %v894_v35, 0  ;;  %v1086_v43 = vxor.u32 2147483647, %v894_v35  ;;  %v896_v44 = vadd.f32 %v3958_v3, %v794_v23  ;;  %v800_v45 = vpop.f32.mrb[5].mxu1  ;;  %v897_v47 = vadd.f32 %v3950_v63, %v685_v36  ;;  %v689_v49 = vpop.f32.mrb[6].mxu0 }
 0x193   : > { %vm1342_vm7 = vcmp.lt.s32.totalorder %v3978_v32, %v3982_v37  ;;  %v3989_v46 = vor.u32 %v1218_v39, %v3952_v0  ;;  %v899_v48 = vadd.f32 %v3954_v1, %v798_v40  ;;  %v802_v50 = vpop.f32.mrb[6].mxu1  ;;  %v1151_v51 = vsel %vm1023_vm5, %v1087_v42, %v895_v30  ;;  %v691_v54 = vpop.f32.mrb[7].mxu0 }
 0x194   : > { %v1150_v52 = vsel %vm1022_vm6, %v1086_v43, %v894_v35  ;;  %vm1024_vm8 = vcmp.lt.s32.totalorder %v896_v44, 0  ;;  %v1088_v53 = vxor.u32 2147483647, %v896_v44  ;;  %v804_v55 = vpop.f32.mrb[7].mxu1  ;;  %v1220_v56 = vand.u32 4294966784, %v1151_v51 }
 0x195   : > { %v1219_v57 = vand.u32 4294966784, %v1150_v52  ;;  %vm1025_vm9 = vcmp.lt.s32.totalorder %v897_v47, 0  ;;  %v1089_v58 = vxor.u32 2147483647, %v897_v47  ;;  %v3994_v59 = vor.u32 %v1216_v33, %v3963_v9 }
 0x196   : > { %vm1027_vm10 = vcmp.lt.s32.totalorder %v899_v48, 0  ;;  %v1091_v60 = vxor.u32 2147483647, %v899_v48  ;;  %v898_v61 = vadd.f32 %v3956_v2, %v687_v41  ;;  %v3998_v62 = vor.u32 %v1220_v56, %v3963_v9 }
 0x197   : > { %v4001_v4 = vor.u32 %v1219_v57, %v3967_v11  ;;  %v4003_v5 = vsel %vm1024_vm8, %v1088_v53, %v896_v44  ;;  %v1153_v6 = vsel %vm1025_vm9, %v1089_v58, %v897_v47  ;;  %v900_v14 = vadd.f32 %v3958_v3, %v800_v45 }
 0x198   : > { %v1222_v7 = vand.u32 4294966784, %v1153_v6  ;;  %v1155_v8 = vsel %vm1027_vm10, %v1091_v60, %v899_v48  ;;  %vm1026_vm11 = vcmp.lt.s32.totalorder %v898_v61, 0  ;;  %v1090_v10 = vxor.u32 2147483647, %v898_v61  ;;  %v695_v12 = vpop.f32.mrb[8].mxu0 }
 0x199   : > { %vm1362_vm12 = vcmp.lt.s32.totalorder %v3989_v46, %v4001_v4  ;;  %v1224_v13 = vand.u32 4294966784, %v1155_v8  ;;  %v901_v15 = vadd.f32 %v3950_v63, %v689_v49  ;;  %v808_v16 = vpop.f32.mrb[8].mxu1  ;;  %v697_v17 = vpop.f32.mrb[9].mxu0  ;;  %v1221_v18 = vand.u32 4294966784, %v4003_v5 }
 0x19a   : > { %v1154_v19 = vsel %vm1026_vm11, %v1090_v10, %v898_v61  ;;  %v903_v20 = vadd.f32 %v3954_v1, %v802_v50  ;;  %v902_v21 = vadd.f32 %v3956_v2, %v691_v54  ;;  %v810_v22 = vpop.f32.mrb[9].mxu1  ;;  %v699_v23 = vpop.f32.mrb[10].mxu0  ;;  %v4013_v24 = vor.u32 %v1222_v7, %v3952_v0 }
 0x19b   : > { %v1223_v25 = vand.u32 4294966784, %v1154_v19  ;;  %vm1028_vm13 = vcmp.lt.s32.totalorder %v900_v14, 0  ;;  %v1092_v26 = vxor.u32 2147483647, %v900_v14  ;;  %v812_v27 = vpop.f32.mrb[10].mxu1  ;;  %v4015_v28 = vpop.f32.mrb[11].mxu0  ;;  %v4018_v34 = vor.u32 %v1224_v13, %v3963_v9 }
 0x19c   : > { %vm1029_vm14 = vcmp.lt.s32.totalorder %v901_v15, 0  ;;  %v1093_v30 = vxor.u32 2147483647, %v901_v15  ;;  %vm1031_vm15 = vcmp.lt.s32.totalorder %v903_v20, 0  ;;  %v1095_v33 = vxor.u32 2147483647, %v903_v20 }
 0x19d   : > { %v4021_v35 = vor.u32 %v1223_v25, %v3967_v11  ;;  %vm1030_vm0 = vcmp.lt.s32.totalorder %v902_v21, 0  ;;  %v1094_v36 = vxor.u32 2147483647, %v902_v21  ;;  %v4023_v39 = vpop.f32.mrb[11].mxu1  ;;  %v4025_v40 = vsel %vm1028_vm13, %v1092_v26, %v900_v14 }
 0x19e   : > { %v1157_v41 = vsel %vm1029_vm14, %v1093_v30, %v901_v15  ;;  %v1159_v42 = vsel %vm1031_vm15, %v1095_v33, %v903_v20  ;;  %v904_v43 = vadd.f32 %v3958_v3, %v804_v55  ;;  %v905_v50 = vadd.f32 %v3950_v63, %v695_v12 }
 0x19f   : > { %vm1382_vm1 = vcmp.lt.s32.totalorder %v4013_v24, %v4021_v35  ;;  %v1226_v44 = vand.u32 4294966784, %v1157_v41  ;;  %v1228_v45 = vand.u32 4294966784, %v1159_v42  ;;  %v1158_v47 = vsel %vm1030_vm0, %v1094_v36, %v902_v21 }
 0x1a0   : > { %v1227_v48 = vand.u32 4294966784, %v1158_v47  ;;  %vm1032_vm2 = vcmp.lt.s32.totalorder %v904_v43, 0  ;;  %v1096_v49 = vxor.u32 2147483647, %v904_v43  ;;  %v4031_v51 = vpop.f32.mrb[12].mxu0  ;;  %v907_v54 = vadd.f32 %v3954_v1, %v808_v16 }
 0x1a1   : > { %v4035_v53 = vor.u32 %v1226_v44, %v3952_v0  ;;  %v906_v55 = vadd.f32 %v3956_v2, %v697_v17  ;;  %v4039_v56 = vpop.f32.mrb[12].mxu1  ;;  %v4041_v57 = vpop.f32.mrb[13].mxu0  ;;  %v4044_v58 = vor.u32 %v1228_v45, %v3963_v9  ;;  %vm1033_vm3 = vcmp.lt.s32.totalorder %v905_v50, 0 }
 0x1a2   : > { %v4047_v60 = vor.u32 %v1227_v48, %v3967_v11  ;;  %v1097_v61 = vxor.u32 2147483647, %v905_v50  ;;  %v4049_v6 = vpop.f32.mrb[13].mxu1  ;;  %v4051_v7 = vpop.f32.mrb[14].mxu0  ;;  %v4054_v8 = vsel %vm1032_vm2, %v1096_v49, %v904_v43  ;;  %vm1035_vm4 = vcmp.lt.s32.totalorder %v907_v54, 0 }
 0x1a3   : > { %v1099_v10 = vxor.u32 2147483647, %v907_v54  ;;  %vm1034_vm5 = vcmp.lt.s32.totalorder %v906_v55, 0  ;;  %v4056_v12 = vpop.f32.mrb[14].mxu1  ;;  %v1098_v14 = vxor.u32 2147483647, %v906_v55  ;;  %v908_v15 = vadd.f32 %v3958_v3, %v810_v22 }
 0x1a4   : > { %vm1402_vm6 = vcmp.lt.s32.totalorder %v4035_v53, %v4047_v60  ;;  %v1161_v13 = vsel %vm1033_vm3, %v1097_v61, %v905_v50  ;;  %v4061_v16 = vpop.f32.mrb[15].mxu0  ;;  %v4063_v17 = vpop.f32.mrb[15].mxu1  ;;  %v909_v21 = vadd.f32 %v3950_v63, %v699_v23  ;;  %v911_v25 = vadd.f32 %v3954_v1, %v812_v27 }
 0x1a5   : > { %v1230_v19 = vand.u32 4294966784, %v1161_v13  ;;  %v1163_v20 = vsel %vm1035_vm4, %v1099_v10, %v907_v54  ;;  %v1162_v30 = vsel %vm1034_vm5, %v1098_v14, %v906_v55  ;;  %vm1036_vm8 = vcmp.lt.s32.totalorder %v908_v15, 0 }
 0x1a6   : > { %v1232_v26 = vand.u32 4294966784, %v1163_v20  ;;  %v1100_v33 = vxor.u32 2147483647, %v908_v15  ;;  %v1231_v41 = vand.u32 4294966784, %v1162_v30  ;;  %vm1037_vm9 = vcmp.lt.s32.totalorder %v909_v21, 0 }
 0x1a7   : > { %v4068_v36 = vor.u32 %v1230_v19, %v3952_v0  ;;  %v1101_v22 = vxor.u32 2147483647, %v909_v21  ;;  %vm1039_vm10 = vcmp.lt.s32.totalorder %v911_v25, 0  ;;  %v1103_v44 = vxor.u32 2147483647, %v911_v25 }
 0x1a8   : > { %v4071_v43 = vsel %vm1036_vm8, %v1100_v33, %v908_v15  ;;  %v4073_v45 = vpop.f32.mrb[16].mxu0  ;;  %v4076_v23 = vor.u32 %v1232_v26, %v3963_v9  ;;  %v4079_v27 = vor.u32 %v1231_v41, %v3967_v11  ;;  %v910_v48 = vadd.f32 %v3956_v2, %v4015_v28 }
 0x1a9   : > { %v1165_v47 = vsel %vm1037_vm9, %v1101_v22, %v909_v21  ;;  %v4083_v49 = vpop.f32.mrb[16].mxu1  ;;  %v4085_v50 = vpop.f32.mrb[17].mxu0  ;;  %v1167_v61 = vsel %vm1039_vm10, %v1103_v44, %v911_v25  ;;  %v912_v10 = vadd.f32 %v3958_v3, %v4023_v39  ;;  %v1281_v39 = vor.u32 %v1217_v38, %v3975_v31 }
 0x1aa   : > { %v1234_v55 = vand.u32 4294966784, %v1165_v47  ;;  %v4090_v13 = vpop.f32.mrb[17].mxu1  ;;  %v4092_v14 = vpop.f32.mrb[18].mxu0  ;;  %vm1422_vm11 = vcmp.lt.s32.totalorder %v4068_v36, %v4079_v27  ;;  %v1236_v15 = vand.u32 4294966784, %v1167_v61  ;;  %vm1038_vm13 = vcmp.lt.s32.totalorder %v910_v48, 0 }
 0x1ab   : > { %v1102_v28 = vxor.u32 2147483647, %v910_v48  ;;  %v4096_v19 = vpop.f32.mrb[18].mxu1  ;;  %v4098_v20 = vpop.f32.mrb[19].mxu0  ;;  %vm1040_vm14 = vcmp.lt.s32.totalorder %v912_v10, 0  ;;  %v1343_v25 = vsel %vm1342_vm7, %v3978_v32, %v3982_v37  ;;  %v913_v41 = vadd.f32 %v3950_v63, %v4031_v51 }
 0x1ac   : > { %v1104_v21 = vxor.u32 2147483647, %v912_v10  ;;  %v4108_v26 = vpop.f32.mrb[19].mxu1  ;;  %v4111_v30 = vor.u32 %v1234_v55, %v3952_v0  ;;  %vm1344_vm15 = vcmp.lt.s32.totalorder %v1343_v25, %v3994_v59  ;;  %v915_v44 = vadd.f32 %v3954_v1, %v4039_v56 }
 0x1ad   : > { %v1166_v33 = vsel %vm1038_vm13, %v1102_v28, %v910_v48  ;;  %v1345_v38 = vsel %vm1344_vm15, %v1343_v25, %v3994_v59  ;;  %v4122_v32 = vor.u32 %v1236_v15, %v3963_v9  ;;  %vm1041_vm0 = vcmp.lt.s32.totalorder %v913_v41, 0 }
 0x1ae   : > { %v1235_v22 = vand.u32 4294966784, %v1166_v33  ;;  %v4116_v29 = vsel %vm1040_vm14, %v1104_v21, %v912_v10  ;;  %vm1346_vm7 = vcmp.lt.s32.totalorder %v1345_v38, %v1281_v39  ;;  %v1105_v37 = vxor.u32 2147483647, %v913_v41 }
 0x1af   : > { %v4127_v48 = vsel %vm1346_vm7, %v1345_v38, %v1281_v39  ;;  %vm1043_vm2 = vcmp.lt.s32.totalorder %v915_v44, 0  ;;  %v1107_v51 = vxor.u32 2147483647, %v915_v44  ;;  %v916_v10 = vadd.f32 %v3958_v3, %v4049_v6 }
 0x1b0   : > { %v4125_v47 = vor.u32 %v1235_v22, %v3967_v11  ;;  %5176 = vst [vmem:[#allocation16_spill] sm:$0xff] %v4127_v48  ;;  %v4129_v55 = vpop.f32.mrb[20].mxu0  ;;  %v1349_v61 = vshra.s32 %v4127_v48, 16  ;;  %v1169_v56 = vsel %vm1041_vm0, %v1105_v37, %v913_v41  ;;  %v1363_v25 = vsel %vm1362_vm12, %v3989_v46, %v4001_v4 }
 0x1b1   : > { %v4135_v15 = vpop.f32.mrb[20].mxu1  ;;  %v4137_v28 = vpop.f32.mrb[21].mxu0  ;;  %v1238_v21 = vand.u32 4294966784, %v1169_v56  ;;  %v1171_v39 = vsel %vm1043_vm2, %v1107_v51, %v915_v44  ;;  %vm1044_vm4 = vcmp.lt.s32.totalorder %v916_v10, 0  ;;  %v1108_v38 = vxor.u32 2147483647, %v916_v10 }
 0x1b2   : > { %vm1442_vm3 = vcmp.lt.s32.totalorder %v4111_v30, %v4125_v47  ;;  %v4146_v33 = vpop.f32.mrb[21].mxu1  ;;  %v4148_v41 = vpop.f32.mrb[22].mxu0  ;;  %v4150_v6 = vcvt.s32.f32 %v1349_v61  ;;  %v1240_v22 = vand.u32 4294966784, %v1171_v39  ;;  %v1285_v44 = vor.u32 %v1221_v18, %v3975_v31 }
 0x1b3   : > { %v4152_v37 = vpop.f32.mrb[22].mxu1  ;;  %v4154_v59 = vpop.f32.mrb[23].mxu0  ;;  %vm1364_vm5 = vcmp.lt.s32.totalorder %v1363_v25, %v3998_v62  ;;  %v914_v46 = vadd.f32 %v3956_v2, %v4041_v57  ;;  %v917_v4 = vadd.f32 %v3950_v63, %v4051_v7  ;;  %v4168_v61 = vor.u32 %v1238_v21, %v3952_v0 }
 0x1b4   : > { %5177 = vst [vmem:[#allocation17_spill] sm:$0xff] %v4150_v6  ;;  %v4164_v51 = vpop.f32.mrb[23].mxu1  ;;  %1352 = vmin.xlane.f32.xlu0 %v4150_v6  ;;  %v4171_v56 = vor.u32 %v1240_v22, %v3963_v9  ;;  %v1365_v5 = vsel %vm1364_vm5, %v1363_v25, %v3998_v62  ;;  %v919_v18 = vadd.f32 %v3954_v1, %v4056_v12 }
 0x1b5   : > { %v4176_v39 = vsel %vm1044_vm4, %v1108_v38, %v916_v10  ;;  %vm1366_vm12 = vcmp.lt.s32.totalorder %v1365_v5, %v1285_v44  ;;  %vm1042_vm8 = vcmp.lt.s32.totalorder %v914_v46, 0  ;;  %v1106_v57 = vxor.u32 2147483647, %v914_v46 }
 0x1b6   : > { %v4178_v7 = vsel %vm1366_vm12, %v1365_v5, %v1285_v44  ;;  %vm1045_vm9 = vcmp.lt.s32.totalorder %v917_v4, 0  ;;  %v1109_v54 = vxor.u32 2147483647, %v917_v4  ;;  %vm1047_vm10 = vcmp.lt.s32.totalorder %v919_v18, 0 }
 0x1b7   : > { %5178 = vst [vmem:[#allocation18_spill] sm:$0xff] %v4178_v7  ;;  %v1369_v21 = vshra.s32 %v4178_v7, 16  ;;  %v1170_v42 = vsel %vm1042_vm8, %v1106_v57, %v914_v46  ;;  %v1111_v22 = vxor.u32 2147483647, %v919_v18  ;;  %v918_v62 = vadd.f32 %v3956_v2, %v4061_v16 }
 0x1b8   : > { %v4183_v25 = vpop.f32.mrb[24].mxu0  ;;  %v1239_v10 = vand.u32 4294966784, %v1170_v42  ;;  %v1173_v38 = vsel %vm1045_vm9, %v1109_v54, %v917_v4  ;;  %v920_v44 = vadd.f32 %v3958_v3, %v4063_v17 }
 0x1b9   : > { %v4188_v5 = vpop.f32.mrb[24].mxu1  ;;  %v4190_v52 = vpop.f32.mrb[25].mxu0  ;;  %v4192_v6 = vcvt.s32.f32 %v1369_v21  ;;  %v1242_v46 = vand.u32 4294966784, %v1173_v38  ;;  %v1175_v57 = vsel %vm1047_vm10, %v1111_v22, %v919_v18  ;;  %vm1046_vm13 = vcmp.lt.s32.totalorder %v918_v62, 0 }
 0x1ba   : > { %v4194_v7 = vpop.f32.mrb[25].mxu1  ;;  %v4196_v16 = vpop.f32.mrb[26].mxu0  ;;  %v4199_v12 = vor.u32 %v1239_v10, %v3967_v11  ;;  %v1244_v42 = vand.u32 4294966784, %v1175_v57  ;;  %v1110_v54 = vxor.u32 2147483647, %v918_v62  ;;  %vm1048_vm14 = vcmp.lt.s32.totalorder %v920_v44, 0 }
 0x1bb   : > { %5179 = vst [vmem:[#allocation19_spill] sm:$0xff] %v4192_v6  ;;  %v4201_v17 = vpop.f32.mrb[26].mxu1  ;;  %v4203_v4 = vpop.f32.mrb[27].mxu0  ;;  %1372 = vmin.xlane.f32.xlu0 %v4192_v6  ;;  %v1112_v21 = vxor.u32 2147483647, %v920_v44  ;;  %v5180_v18 = vand.u32 4294966784, %v4025_v40  ;;  %v1383_v10 = vsel %vm1382_vm1, %v4013_v24, %v4021_v35  ;;  %v921_v38 = vadd.f32 %v3950_v63, %v4073_v45 }
 0x1bc   : > { %v4216_v57 = vpop.f32.mrb[27].mxu1  ;;  %vm1462_vm15 = vcmp.lt.s32.totalorder %v4168_v61, %v4199_v12  ;;  %v4221_v6 = vor.u32 %v1242_v46, %v3952_v0  ;;  %v1174_v40 = vsel %vm1046_vm13, %v1110_v54, %v918_v62  ;;  %vm1384_vm7 = vcmp.lt.s32.totalorder %v1383_v10, %v4018_v34 }
 0x1bd   : > { %v1289_v22 = vor.u32 %v5180_v18, %v3975_v31  ;;  %5181 = vst [vmem:[#allocation20_spill] sm:$0xff] %v4216_v57  ;;  %v1243_v18 = vand.u32 4294966784, %v1174_v40  ;;  %v4225_v48 = vsel %vm1048_vm14, %v1112_v21, %v920_v44  ;;  %v1385_v24 = vsel %vm1384_vm7, %v1383_v10, %v4018_v34 }
 0x1be   : > { %vm1049_vm1 = vcmp.lt.s32.totalorder %v921_v38, 0  ;;  %v4229_v35 = vor.u32 %v1244_v42, %v3963_v9  ;;  %v1113_v45 = vxor.u32 2147483647, %v921_v38  ;;  %v923_v57 = vadd.f32 %v3954_v1, %v4083_v49 }
 0x1bf   : > { %vm1386_vm0 = vcmp.lt.s32.totalorder %v1385_v24, %v1289_v22  ;;  %v4234_v46 = vor.u32 %v1243_v18, %v3967_v11  ;;  %v924_v44 = vadd.f32 %v3958_v3, %v4090_v13 }
 0x1c0   : > { %v4237_v54 = vsel %vm1386_vm0, %v1385_v24, %v1289_v22  ;;  %v4241_v34 = vpop.f32.mrb[28].mxu0  ;;  %v1177_v21 = vsel %vm1049_vm1, %v1113_v45, %v921_v38  ;;  %vm1051_vm2 = vcmp.lt.s32.totalorder %v923_v57, 0  ;;  %v1115_v10 = vxor.u32 2147483647, %v923_v57 }
 0x1c1   : > { %5182 = vst [vmem:[#allocation21_spill] sm:$0xff] %v4237_v54  ;;  %v1389_v42 = vshra.s32 %v4237_v54, 16  ;;  %v4244_v40 = vpop.f32.mrb[28].mxu1  ;;  %v4246_v49 = vpop.f32.mrb[29].mxu0  ;;  %vm1482_vm4 = vcmp.lt.s32.totalorder %v4221_v6, %v4234_v46  ;;  %v1246_v18 = vand.u32 4294966784, %v1177_v21  ;;  %vm1052_vm5 = vcmp.lt.s32.totalorder %v924_v44, 0 }
 0x1c2   : > { %5183 = vst [vmem:[#allocation22_spill] sm:$0xff] %v4246_v49  ;;  %v1116_v22 = vxor.u32 2147483647, %v924_v44  ;;  %v4250_v24 = vpop.f32.mrb[29].mxu1  ;;  %v4252_v13 = vpop.f32.mrb[30].mxu0  ;;  %v1179_v54 = vsel %vm1051_vm2, %v1115_v10, %v923_v57  ;;  %v1403_v38 = vsel %vm1402_vm6, %v4035_v53, %v4047_v60  ;;  %v922_v45 = vadd.f32 %v3956_v2, %v4085_v50 }
 0x1c3   : > { %5184 = vst [vmem:[#allocation23_spill] sm:$0xff] %v4250_v24  ;;  %5185 = vst [vmem:[#allocation24_spill] sm:$0xff] %v4252_v13  ;;  %v4254_v62 = vcvt.s32.f32 %v1389_v42  ;;  %v4263_v49 = vpop.f32.mrb[30].mxu1  ;;  %v4265_v21 = vpop.f32.mrb[31].mxu0  ;;  %v4268_v24 = vor.u32 %v1246_v18, %v3952_v0  ;;  %v5188_v57 = vand.u32 4294966784, %v4054_v8  ;;  %vm1404_vm12 = vcmp.lt.s32.totalorder %v1403_v38, %v4044_v58 }
 0x1c4   : > { %5187 = vst [vmem:[#allocation26_spill] sm:$0xff] %v4265_v21  ;;  %v4270_v13 = vsel %vm1052_vm5, %v1116_v22, %v924_v44  ;;  %v4276_v10 = vpop.f32.mrb[31].mxu1  ;;  %v1248_v53 = vand.u32 4294966784, %v1179_v54  ;;  %v1405_v60 = vsel %vm1404_vm12, %v1403_v38, %v4044_v58  ;;  %vm1050_vm6 = vcmp.lt.s32.totalorder %v922_v45, 0 }
 0x1c5   : > { %5186 = vst [vmem:[#allocation25_spill] sm:$0xff] %v4254_v62  ;;  %v1293_v42 = vor.u32 %v5188_v57, %v3975_v31  ;;  %5189 = vst [vmem:[#allocation27_spill] sm:$0xff] %v4276_v10  ;;  %1392 = vmin.xlane.f32.xlu1 %v4254_v62  ;;  %v1114_v50 = vxor.u32 2147483647, %v922_v45  ;;  %v925_v44 = vadd.f32 %v3950_v63, %v4092_v14 }
 0x1c6   : > { %v927_v8 = vadd.f32 %v3954_v1, %v4096_v19  ;;  %v926_v62 = vadd.f32 %v3956_v2, %v4098_v20  ;;  %v928_v58 = vadd.f32 %v3958_v3, %v4108_v26 }
 0x1c7   : > { %vm1406_vm8 = vcmp.lt.s32.totalorder %v1405_v60, %v1293_v42  ;;  %v1178_v57 = vsel %vm1050_vm6, %v1114_v50, %v922_v45  ;;  %vm1053_vm9 = vcmp.lt.s32.totalorder %v925_v44, 0  ;;  %v1117_v18 = vxor.u32 2147483647, %v925_v44 }
 0x1c8   : > { %v4285_v22 = vsel %vm1406_vm8, %v1405_v60, %v1293_v42  ;;  %v1247_v38 = vand.u32 4294966784, %v1178_v57  ;;  %vm1055_vm10 = vcmp.lt.s32.totalorder %v927_v8, 0  ;;  %v1119_v10 = vxor.u32 2147483647, %v927_v8 }
 0x1c9   : > { %5190 = vst [vmem:[#allocation28_spill] sm:$0xff] %v4285_v22  ;;  %v1409_v54 = vshra.s32 %v4285_v22, 16  ;;  %vm1054_vm13 = vcmp.lt.s32.totalorder %v926_v62, 0  ;;  %v1118_v14 = vxor.u32 2147483647, %v926_v62  ;;  %v1181_v45 = vsel %vm1053_vm9, %v1117_v18, %v925_v44 }
 0x1ca   : > { %v4295_v19 = vor.u32 %v1247_v38, %v3967_v11  ;;  %vm1056_vm14 = vcmp.lt.s32.totalorder %v928_v58, 0  ;;  %v1250_v20 = vand.u32 4294966784, %v1181_v45  ;;  %v1183_v42 = vsel %vm1055_vm10, %v1119_v10, %v927_v8 }
 0x1cb   : > { %v4292_v21 = vcvt.s32.f32 %v1409_v54  ;;  %v1182_v60 = vsel %vm1054_vm13, %v1118_v14, %v926_v62  ;;  %v1120_v26 = vxor.u32 2147483647, %v928_v58  ;;  %v4298_v50 = vor.u32 %v1248_v53, %v3963_v9 }
 0x1cc   : > { %vm1502_vm7 = vcmp.lt.s32.totalorder %v4268_v24, %v4295_v19  ;;  %v1252_v57 = vand.u32 4294966784, %v1183_v42  ;;  %v1251_v54 = vand.u32 4294966784, %v1182_v60  ;;  %v4304_v22 = vor.u32 %v1250_v20, %v3952_v0 }
 0x1cd   : > { %1412 = vmin.xlane.f32.xlu1 %v4292_v21  ;;  %v4306_v38 = vsel %vm1056_vm14, %v1120_v26, %v928_v58  ;;  %v5191_v10 = vand.u32 4294966784, %v4071_v43  ;;  %v1423_v53 = vsel %vm1422_vm11, %v4068_v36, %v4079_v27  ;;  %v5192_v8 = vand.u32 4294966784, %v4116_v29 }
 0x1ce   : > { %v4317_v18 = vor.u32 %v1252_v57, %v3963_v9  ;;  %v4320_v44 = vor.u32 %v1251_v54, %v3967_v11  ;;  %vm1424_vm1 = vcmp.lt.s32.totalorder %v1423_v53, %v4076_v23  ;;  %v1443_v36 = vsel %vm1442_vm3, %v4111_v30, %v4125_v47 }
 0x1cf   : > { %v1297_v62 = vor.u32 %v5191_v10, %v3975_v31  ;;  %v1301_v58 = vor.u32 %v5192_v8, %v3975_v31  ;;  %v1425_v43 = vsel %vm1424_vm1, %v1423_v53, %v4076_v23  ;;  %v929_v27 = vadd.f32 %v3950_v63, %v4129_v55 }
 0x1d0   : > { %v931_v14 = vadd.f32 %v3954_v1, %v4135_v15  ;;  %vm1522_vm11 = vcmp.lt.s32.totalorder %v4304_v22, %v4320_v44  ;;  %vm1444_vm2 = vcmp.lt.s32.totalorder %v1443_v36, %v4122_v32  ;;  %v930_v23 = vadd.f32 %v3956_v2, %v4137_v28 }
 0x1d1   : > { %vm1426_vm0 = vcmp.lt.s32.totalorder %v1425_v43, %v1297_v62  ;;  %v1445_v45 = vsel %vm1444_vm2, %v1443_v36, %v4122_v32  ;;  %vm1057_vm3 = vcmp.lt.s32.totalorder %v929_v27, 0  ;;  %v1121_v30 = vxor.u32 2147483647, %v929_v27 }
 0x1d2   : > { %v4341_v29 = vsel %vm1426_vm0, %v1425_v43, %v1297_v62  ;;  %vm1446_vm5 = vcmp.lt.s32.totalorder %v1445_v45, %v1301_v58  ;;  %vm1059_vm12 = vcmp.lt.s32.totalorder %v931_v14, 0  ;;  %v1123_v55 = vxor.u32 2147483647, %v931_v14 }
 0x1d3   : > { %v1429_v47 = vshra.s32 %v4341_v29, 16  ;;  %v4345_v15 = vsel %vm1446_vm5, %v1445_v45, %v1301_v58  ;;  %v1185_v20 = vsel %vm1057_vm3, %v1121_v30, %v929_v27  ;;  %vm1058_vm6 = vcmp.lt.s32.totalorder %v930_v23, 0 }
 0x1d4   : > { %v1122_v42 = vxor.u32 2147483647, %v930_v23  ;;  %v1449_v28 = vshra.s32 %v4345_v15, 16  ;;  %v1254_v26 = vand.u32 4294966784, %v1185_v20  ;;  %v1187_v57 = vsel %vm1059_vm12, %v1123_v55, %v931_v14 }
 0x1d5   : > { %v4347_v60 = vcvt.s32.f32 %v1429_v47  ;;  %v1256_v54 = vand.u32 4294966784, %v1187_v57  ;;  %v932_v10 = vadd.f32 %v3958_v3, %v4146_v33  ;;  %v933_v62 = vadd.f32 %v3950_v63, %v4148_v41 }
 0x1d6   : > { %v1186_v32 = vsel %vm1058_vm6, %v1122_v42, %v930_v23  ;;  %v4355_v53 = vcvt.s32.f32 %v1449_v28  ;;  %v4358_v8 = vor.u32 %v1254_v26, %v3952_v0  ;;  %v935_v43 = vadd.f32 %v3954_v1, %v4152_v37 }
 0x1d7   : > { %1432 = vmin.xlane.f32.xlu0 %v4347_v60  ;;  %v1255_v58 = vand.u32 4294966784, %v1186_v32  ;;  %v1253_v36 = vand.u32 4294966784, %v4306_v38  ;;  %vm1060_vm8 = vcmp.lt.s32.totalorder %v932_v10, 0  ;;  %v1124_v27 = vxor.u32 2147483647, %v932_v10 }
 0x1d8   : > { %vm1061_vm9 = vcmp.lt.s32.totalorder %v933_v62, 0  ;;  %1452 = vmin.xlane.f32.xlu1 %v4355_v53  ;;  %v1125_v41 = vxor.u32 2147483647, %v933_v62  ;;  %vm1063_vm10 = vcmp.lt.s32.totalorder %v935_v43, 0  ;;  %v1127_v14 = vxor.u32 2147483647, %v935_v43 }
 0x1d9   : > { %v4365_v33 = vor.u32 %v1255_v58, %v3967_v11  ;;  %v4368_v23 = vor.u32 %v1256_v54, %v3963_v9  ;;  %v4370_v45 = vsel %vm1060_vm8, %v1124_v27, %v932_v10  ;;  %v934_v37 = vadd.f32 %v3956_v2, %v4154_v59 }
 0x1da   : > { %v936_v30 = vadd.f32 %v3958_v3, %v4164_v51  ;;  %v1189_v47 = vsel %vm1061_vm9, %v1125_v41, %v933_v62  ;;  %v1191_v55 = vsel %vm1063_vm10, %v1127_v14, %v935_v43  ;;  %v5193_v20 = vand.u32 4294966784, %v4176_v39 }
 0x1db   : > { %vm1542_vm13 = vcmp.lt.s32.totalorder %v4358_v8, %v4365_v33  ;;  %v1258_v28 = vand.u32 4294966784, %v1189_v47  ;;  %v1260_v26 = vand.u32 4294966784, %v1191_v55  ;;  %vm1062_vm14 = vcmp.lt.s32.totalorder %v934_v37, 0 }
 0x1dc   : > { %v1305_v42 = vor.u32 %v5193_v20, %v3975_v31  ;;  %v1126_v57 = vxor.u32 2147483647, %v934_v37  ;;  %v1257_v54 = vand.u32 4294966784, %v4370_v45  ;;  %vm1064_vm1 = vcmp.lt.s32.totalorder %v936_v30, 0 }
 0x1dd   : > { %v1128_v59 = vxor.u32 2147483647, %v936_v30  ;;  %v1463_v51 = vsel %vm1462_vm15, %v4168_v61, %v4199_v12  ;;  %v4388_v32 = vor.u32 %v1258_v28, %v3952_v0  ;;  %v5194_v39 = vand.u32 4294966784, %v4225_v48 }
 0x1de   : > { %v1190_v10 = vsel %vm1062_vm14, %v1126_v57, %v934_v37  ;;  %vm1464_vm0 = vcmp.lt.s32.totalorder %v1463_v51, %v4171_v56  ;;  %v4395_v58 = vor.u32 %v1260_v26, %v3963_v9  ;;  %v1483_v61 = vsel %vm1482_vm4, %v4221_v6, %v4234_v46 }
 0x1df   : > { %v1309_v62 = vor.u32 %v5194_v39, %v3975_v31  ;;  %v1259_v43 = vand.u32 4294966784, %v1190_v10  ;;  %v1465_v27 = vsel %vm1464_vm0, %v1463_v51, %v4171_v56  ;;  %v4403_v12 = vsel %vm1064_vm1, %v1128_v59, %v936_v30 }
 0x1e0   : > { %vm1466_vm15 = vcmp.lt.s32.totalorder %v1465_v27, %v1305_v42  ;;  %vm1484_vm2 = vcmp.lt.s32.totalorder %v1483_v61, %v4229_v35  ;;  %v937_v48 = vadd.f32 %v3950_v63, %v4183_v25  ;;  %v939_v37 = vadd.f32 %v3954_v1, %v4188_v5 }
 0x1e1   : > { %v4409_v41 = vor.u32 %v1259_v43, %v3967_v11  ;;  %v4411_v14 = vsel %vm1466_vm15, %v1465_v27, %v1305_v42  ;;  %v1485_v56 = vsel %vm1484_vm2, %v1483_v61, %v4229_v35  ;;  %v938_v5 = vadd.f32 %v3956_v2, %v4190_v52 }
 0x1e2   : > { %v1469_v6 = vshra.s32 %v4411_v14, 16  ;;  %vm1486_vm4 = vcmp.lt.s32.totalorder %v1485_v56, %v1309_v62  ;;  %vm1065_vm3 = vcmp.lt.s32.totalorder %v937_v48, 0  ;;  %v1129_v46 = vxor.u32 2147483647, %v937_v48 }
 0x1e3   : > { %vm1562_vm5 = vcmp.lt.s32.totalorder %v4388_v32, %v4409_v41  ;;  %v4419_v30 = vsel %vm1486_vm4, %v1485_v56, %v1309_v62  ;;  %vm1067_vm12 = vcmp.lt.s32.totalorder %v939_v37, 0  ;;  %v1131_v25 = vxor.u32 2147483647, %v939_v37 }
 0x1e4   : > { %v4421_v47 = vcvt.s32.f32 %v1469_v6  ;;  %v1489_v55 = vshra.s32 %v4419_v30, 16  ;;  %v1193_v35 = vsel %vm1065_vm3, %v1129_v46, %v937_v48  ;;  %v940_v28 = vadd.f32 %v3958_v3, %v4194_v7  ;;  %v5195_v48 = vld [vmem:[#allocation20_spill] sm:$0xff] }
 0x1e5   : > { %v1262_v20 = vand.u32 4294966784, %v1193_v35  ;;  %v1195_v42 = vsel %vm1067_vm12, %v1131_v25, %v939_v37  ;;  %v941_v26 = vadd.f32 %v3950_v63, %v4196_v16  ;;  %vm1066_vm6 = vcmp.lt.s32.totalorder %v938_v5, 0 }
 0x1e6   : > { %1472 = vmin.xlane.f32.xlu0 %v4421_v47  ;;  %v4431_v57 = vcvt.s32.f32 %v1489_v55  ;;  %v1264_v59 = vand.u32 4294966784, %v1195_v42  ;;  %v1130_v51 = vxor.u32 2147483647, %v938_v5  ;;  %v1261_v10 = vand.u32 4294966784, %v4403_v12 }
 0x1e7   : > { %vm1068_vm8 = vcmp.lt.s32.totalorder %v940_v28, 0  ;;  %v1132_v39 = vxor.u32 2147483647, %v940_v28  ;;  %vm1069_vm9 = vcmp.lt.s32.totalorder %v941_v26, 0  ;;  %v4436_v52 = vor.u32 %v1262_v20, %v3952_v0 }
 0x1e8   : > { %1492 = vmin.xlane.f32.xlu1 %v4431_v57  ;;  %v1194_v7 = vsel %vm1066_vm6, %v1130_v51, %v938_v5  ;;  %v1133_v62 = vxor.u32 2147483647, %v941_v26  ;;  %v943_v16 = vadd.f32 %v3954_v1, %v4201_v17  ;;  %v942_v61 = vadd.f32 %v3956_v2, %v4203_v4 }
 0x1e9   : > { %v1263_v43 = vand.u32 4294966784, %v1194_v7  ;;  %v4440_v27 = vsel %vm1068_vm8, %v1132_v39, %v940_v28  ;;  %v944_v56 = vadd.f32 %v3958_v3, %v5195_v48  ;;  %v4447_v37 = vor.u32 %v1264_v59, %v3963_v9 }
 0x1ea   : > { %v1197_v6 = vsel %vm1069_vm9, %v1133_v62, %v941_v26  ;;  %vm1071_vm10 = vcmp.lt.s32.totalorder %v943_v16, 0  ;;  %v1135_v46 = vxor.u32 2147483647, %v943_v16  ;;  %vm1070_vm14 = vcmp.lt.s32.totalorder %v942_v61, 0 }
 0x1eb   : > { %v4450_v25 = vor.u32 %v1263_v43, %v3967_v11  ;;  %v1266_v55 = vand.u32 4294966784, %v1197_v6  ;;  %v1134_v17 = vxor.u32 2147483647, %v942_v61  ;;  %v1265_v35 = vand.u32 4294966784, %v4440_v27 }
 0x1ec   : > { %v1199_v5 = vsel %vm1071_vm10, %v1135_v46, %v943_v16  ;;  %vm1072_vm1 = vcmp.lt.s32.totalorder %v944_v56, 0  ;;  %v1136_v4 = vxor.u32 2147483647, %v944_v56  ;;  %v5196_v28 = vand.u32 4294966784, %v4270_v13 }
 0x1ed   : > { %vm1582_vm0 = vcmp.lt.s32.totalorder %v4436_v52, %v4450_v25  ;;  %v1268_v20 = vand.u32 4294966784, %v1199_v5  ;;  %v1198_v42 = vsel %vm1070_vm14, %v1134_v17, %v942_v61  ;;  %v4459_v59 = vor.u32 %v1266_v55, %v3952_v0  ;;  %v5197_v61 = vld [vmem:[#allocation22_spill] sm:$0xff]  ;;  %v5198_v55 = vld [vmem:[#allocation23_spill] sm:$0xff]  ;;  %v5199_v5 = vld [vmem:[#allocation24_spill] sm:$0xff] }
 0x1ee   : > { %v1313_v26 = vor.u32 %v5196_v28, %v3975_v31  ;;  %v1267_v51 = vand.u32 4294966784, %v1198_v42  ;;  %v4461_v39 = vsel %vm1072_vm1, %v1136_v4, %v944_v56  ;;  %v1503_v7 = vsel %vm1502_vm7, %v4268_v24, %v4295_v19 }
 0x1ef   : > { %v4469_v62 = vor.u32 %v1268_v20, %v3963_v9  ;;  %vm1504_vm15 = vcmp.lt.s32.totalorder %v1503_v7, %v4298_v50  ;;  %v1317_v13 = vor.u32 %v1253_v36, %v3975_v31  ;;  %v1523_v16 = vsel %vm1522_vm11, %v4304_v22, %v4320_v44 }
 0x1f0   : > { %v4481_v43 = vor.u32 %v1267_v51, %v3967_v11  ;;  %v1505_v24 = vsel %vm1504_vm15, %v1503_v7, %v4298_v50  ;;  %vm1524_vm7 = vcmp.lt.s32.totalorder %v1523_v16, %v4317_v18  ;;  %v945_v19 = vadd.f32 %v3950_v63, %v4241_v34 }
 0x1f1   : > { %vm1506_vm2 = vcmp.lt.s32.totalorder %v1505_v24, %v1313_v26  ;;  %v1525_v38 = vsel %vm1524_vm7, %v1523_v16, %v4317_v18  ;;  %v947_v36 = vadd.f32 %v3954_v1, %v4244_v40  ;;  %v946_v48 = vadd.f32 %v3956_v2, %v5197_v61  ;;  %v5200_v61 = vld [vmem:[#allocation26_spill] sm:$0xff] }
 0x1f2   : > { %vm1602_vm11 = vcmp.lt.s32.totalorder %v4459_v59, %v4481_v43  ;;  %v4494_v22 = vsel %vm1506_vm2, %v1505_v24, %v1313_v26  ;;  %vm1526_vm4 = vcmp.lt.s32.totalorder %v1525_v38, %v1317_v13  ;;  %vm1073_vm3 = vcmp.lt.s32.totalorder %v945_v19, 0 }
 0x1f3   : > { %v1509_v50 = vshra.s32 %v4494_v22, 16  ;;  %v4497_v44 = vsel %vm1526_vm4, %v1525_v38, %v1317_v13  ;;  %v1137_v34 = vxor.u32 2147483647, %v945_v19  ;;  %vm1075_vm12 = vcmp.lt.s32.totalorder %v947_v36, 0 }
 0x1f4   : > { %v1529_v18 = vshra.s32 %v4497_v44, 16  ;;  %v1139_v56 = vxor.u32 2147483647, %v947_v36  ;;  %vm1074_vm6 = vcmp.lt.s32.totalorder %v946_v48, 0  ;;  %v1138_v40 = vxor.u32 2147483647, %v946_v48 }
 0x1f5   : > { %v4500_v6 = vcvt.s32.f32 %v1509_v50  ;;  %v1201_v46 = vsel %vm1073_vm3, %v1137_v34, %v945_v19  ;;  %v948_v17 = vadd.f32 %v3958_v3, %v5198_v55  ;;  %v949_v4 = vadd.f32 %v3950_v63, %v5199_v5  ;;  %v5201_v55 = vld [vmem:[#allocation27_spill] sm:$0xff] }
 0x1f6   : > { %v4506_v20 = vcvt.s32.f32 %v1529_v18  ;;  %v1270_v42 = vand.u32 4294966784, %v1201_v46  ;;  %v1203_v28 = vsel %vm1075_vm12, %v1139_v56, %v947_v36  ;;  %v1202_v26 = vsel %vm1074_vm6, %v1138_v40, %v946_v48 }
 0x1f7   : > { %1512 = vmin.xlane.f32.xlu0 %v4500_v6  ;;  %v1272_v51 = vand.u32 4294966784, %v1203_v28  ;;  %v1271_v7 = vand.u32 4294966784, %v1202_v26  ;;  %vm1076_vm8 = vcmp.lt.s32.totalorder %v948_v17, 0  ;;  %v1140_v13 = vxor.u32 2147483647, %v948_v17 }
 0x1f8   : > { %1532 = vmin.xlane.f32.xlu1 %v4506_v20  ;;  %v1334_v16 = vor.u32 %v1270_v42, %v3952_v0  ;;  %vm1077_vm9 = vcmp.lt.s32.totalorder %v949_v4, 0  ;;  %v1141_v24 = vxor.u32 2147483647, %v949_v4  ;;  %v951_v63 = vadd.f32 %v3954_v1, %v4263_v49 }
 0x1f9   : > { %v1269_v19 = vand.u32 4294966784, %v4461_v39  ;;  %v1336_v38 = vor.u32 %v1272_v51, %v3963_v9  ;;  %v1335_v36 = vor.u32 %v1271_v7, %v3967_v11  ;;  %v950_v48 = vadd.f32 %v3956_v2, %v5200_v61 }
 0x1fa   : > { %v1204_v50 = vsel %vm1076_vm8, %v1140_v13, %v948_v17  ;;  %v1205_v34 = vsel %vm1077_vm9, %v1141_v24, %v949_v4  ;;  %vm1079_vm10 = vcmp.lt.s32.totalorder %v951_v63, 0  ;;  %v1143_v18 = vxor.u32 2147483647, %v951_v63 }
 0x1fb   : > { %vm1622_vm14 = vcmp.lt.s32.totalorder %v1334_v16, %v1335_v36  ;;  %v1274_v56 = vand.u32 4294966784, %v1205_v34  ;;  %vm1078_vm1 = vcmp.lt.s32.totalorder %v950_v48, 0  ;;  %v1142_v40 = vxor.u32 2147483647, %v950_v48 }
 0x1fc   : > { %v1207_v46 = vsel %vm1079_vm10, %v1143_v18, %v951_v63  ;;  %v952_v1 = vadd.f32 %v3958_v3, %v5201_v55  ;;  %v1321_v49 = vor.u32 %v1257_v54, %v3975_v31  ;;  %v1543_v2 = vsel %vm1542_vm13, %v4358_v8, %v4365_v33 }
 0x1fd   : > { %v1338_v39 = vor.u32 %v1274_v56, %v3952_v0  ;;  %v1276_v17 = vand.u32 4294966784, %v1207_v46  ;;  %v1206_v5 = vsel %vm1078_vm1, %v1142_v40, %v950_v48  ;;  %vm1544_vm15 = vcmp.lt.s32.totalorder %v1543_v2, %v4368_v23 }
 0x1fe   : > { %v1275_v4 = vand.u32 4294966784, %v1206_v5  ;;  %vm1080_vm7 = vcmp.lt.s32.totalorder %v952_v1, 0  ;;  %v1144_v42 = vxor.u32 2147483647, %v952_v1  ;;  %v1545_v3 = vsel %vm1544_vm15, %v1543_v2, %v4368_v23  ;;  %v1918_v2 = vld [vmem:[#allocation7 + $0x180] sm:$0xff] }
 0x1ff   : > { %v1273_v28 = vand.u32 4294966784, %v1204_v50  ;;  %vm1546_vm2 = vcmp.lt.s32.totalorder %v1545_v3, %v1321_v49  ;;  %v1325_v45 = vor.u32 %v1261_v10, %v3975_v31  ;;  %v1563_v8 = vsel %vm1562_vm5, %v4388_v32, %v4409_v41  ;;  %v1870_v5 = vld [vmem:[#allocation7] sm:$0xff] }
 0x200   : > { %v1339_v33 = vor.u32 %v1275_v4, %v3967_v11  ;;  %v1208_v54 = vsel %vm1080_vm7, %v1144_v42, %v952_v1  ;;  %v4540_v26 = vsel %vm1546_vm2, %v1545_v3, %v1321_v49  ;;  %vm1564_vm13 = vcmp.lt.s32.totalorder %v1563_v8, %v4395_v58  ;;  %v1886_v1 = vld [vmem:[#allocation7 + $0x80] sm:$0xff]  ;;  %v1887_v49 = vld [vmem:[#allocation7 + $0x88] sm:$0xff] }
 0x201   : > { %v1340_v23 = vor.u32 %v1276_v17, %v3963_v9  ;;  %v1277_v51 = vand.u32 4294966784, %v1208_v54  ;;  %v1549_v7 = vshra.s32 %v4540_v26, 16  ;;  %v1565_v12 = vsel %vm1564_vm13, %v1563_v8, %v4395_v58  ;;  %v1919_v17 = vld [vmem:[#allocation7 + $0x188] sm:$0xff]  ;;  %v1888_v8 = vld [vmem:[#allocation7 + $0x90] sm:$0xff]  ;;  %v1889_v54 = vld [vmem:[#allocation7 + $0x98] sm:$0xff] }
 0x202   : > { %vm1642_vm4 = vcmp.lt.s32.totalorder %v1338_v39, %v1339_v33  ;;  %vm1566_vm3 = vcmp.lt.s32.totalorder %v1565_v12, %v1325_v45  ;;  %v1329_v32 = vor.u32 %v1265_v35, %v3975_v31  ;;  %v1583_v41 = vsel %vm1582_vm0, %v4436_v52, %v4450_v25  ;;  %v1871_v4 = vld [vmem:[#allocation7 + $0x8] sm:$0xff] }
 0x203   : > { %v4554_v10 = vcvt.s32.f32 %v1549_v7  ;;  %v4556_v13 = vsel %vm1566_vm3, %v1565_v12, %v1325_v45  ;;  %vm1584_vm5 = vcmp.lt.s32.totalorder %v1583_v41, %v4447_v37  ;;  %v1603_v58 = vsel %vm1602_vm11, %v4459_v59, %v4481_v43  ;;  %v1903_v45 = vld [vmem:[#allocation7 + $0x108] sm:$0xff] }
 0x204   : > { %v1569_v27 = vshra.s32 %v4556_v13, 16  ;;  %v1585_v35 = vsel %vm1584_vm5, %v1583_v41, %v4447_v37  ;;  %v1333_v24 = vor.u32 %v1269_v19, %v3975_v31  ;;  %vm1604_vm0 = vcmp.lt.s32.totalorder %v1603_v58, %v4469_v62  ;;  %v1873_v41 = vld [vmem:[#allocation7 + $0x18] sm:$0xff] }
 0x205   : > { %1552 = vmin.xlane.f32.xlu0 %v4554_v10  ;;  %vm1586_vm12 = vcmp.lt.s32.totalorder %v1585_v35, %v1329_v32  ;;  %v1605_v52 = vsel %vm1604_vm0, %v1603_v58, %v4469_v62  ;;  %v1337_v25 = vor.u32 %v1273_v28, %v3975_v31  ;;  %v1623_v63 = vsel %vm1622_vm14, %v1334_v16, %v1335_v36  ;;  %v1902_v28 = vld [vmem:[#allocation7 + $0x100] sm:$0xff]  ;;  %v1904_v58 = vld [vmem:[#allocation7 + $0x110] sm:$0xff] }
 0x206   : > { %v4572_v61 = vcvt.s32.f32 %v1569_v27  ;;  %v4574_v59 = vsel %vm1586_vm12, %v1585_v35, %v1329_v32  ;;  %vm1606_vm11 = vcmp.lt.s32.totalorder %v1605_v52, %v1333_v24  ;;  %vm1624_vm6 = vcmp.lt.s32.totalorder %v1623_v63, %v1336_v38  ;;  %v1872_v32 = vld [vmem:[#allocation7 + $0x10] sm:$0xff]  ;;  %v1905_v35 = vld [vmem:[#allocation7 + $0x118] sm:$0xff] }
 0x207   : > { %v1589_v37 = vshra.s32 %v4574_v59, 16  ;;  %v4577_v43 = vsel %vm1606_vm11, %v1605_v52, %v1333_v24  ;;  %v1625_v19 = vsel %vm1624_vm6, %v1623_v63, %v1336_v38  ;;  %v1643_v48 = vsel %vm1642_vm4, %v1338_v39, %v1339_v33  ;;  %v1890_v24 = vld [vmem:[#allocation7 + $0xa0] sm:$0xff]  ;;  %v1891_v52 = vld [vmem:[#allocation7 + $0xa8] sm:$0xff] }
 0x208   : > { %1572 = vmin.xlane.f32.xlu1 %v4572_v61  ;;  %v1609_v62 = vshra.s32 %v4577_v43, 16  ;;  %vm1626_vm8 = vcmp.lt.s32.totalorder %v1625_v19, %v1337_v25  ;;  %v1341_v16 = vor.u32 %v1277_v51, %v3975_v31  ;;  %vm1644_vm9 = vcmp.lt.s32.totalorder %v1643_v48, %v1340_v23  ;;  %v1921_v51 = vld [vmem:[#allocation7 + $0x198] sm:$0xff] }
 0x209   : > { %v4583_v36 = vcvt.s32.f32 %v1589_v37  ;;  %v4585_v50 = vsel %vm1626_vm8, %v1625_v19, %v1337_v25  ;;  %v1645_v34 = vsel %vm1644_vm9, %v1643_v48, %v1340_v23  ;;  %v3260_v39 = vpack.c.bf16 %v1887_v49, %v1886_v1  ;;  %v1920_v23 = vld [vmem:[#allocation7 + $0x190] sm:$0xff]  ;;  %v1922_v37 = vld [vmem:[#allocation7 + $0x1a0] sm:$0xff]  ;;  %v1923_v19 = vld [vmem:[#allocation7 + $0x1a8] sm:$0xff] }
 0x20a   : > { %v4587_v18 = vcvt.s32.f32 %v1609_v62  ;;  %v1629_v56 = vshra.s32 %v4585_v50, 16  ;;  %vm1646_vm10 = vcmp.lt.s32.totalorder %v1645_v34, %v1341_v16  ;;  %v3292_v42 = vpack.c.bf16 %v1919_v17, %v1918_v2  ;;  %v1874_v48 = vld [vmem:[#allocation7 + $0x20] sm:$0xff]  ;;  %v1892_v1 = vld [vmem:[#allocation7 + $0xb0] sm:$0xff]  ;;  %v1893_v49 = vld [vmem:[#allocation7 + $0xb8] sm:$0xff] }
 0x20b   : > { %1592 = vmin.xlane.f32.xlu0 %v4583_v36  ;;  %v4591_v38 = vsel %vm1646_vm10, %v1645_v34, %v1341_v16  ;;  %v3262_v3 = vpack.c.bf16 %v1871_v4, %v1870_v5  ;;  %3261 = vmatprep.subr.bf16.mxu0 %v3260_v39  ;;  %v3294_v33 = vpack.c.bf16 %v1903_v45, %v1902_v28  ;;  %v1875_v16 = vld [vmem:[#allocation7 + $0x28] sm:$0xff]  ;;  %v1906_v34 = vld [vmem:[#allocation7 + $0x120] sm:$0xff]  ;;  %v1924_v2 = vld [vmem:[#allocation7 + $0x1b0] sm:$0xff] }
 0x20c   : > { %1612 = vmin.xlane.f32.xlu1 %v4587_v18  ;;  %v4594_v40 = vcvt.s32.f32 %v1629_v56  ;;  %v1649_v46 = vshra.s32 %v4591_v38, 16  ;;  %3293 = vmatprep.subr.bf16.mxu1 %v3292_v42  ;;  %v3264_v7 = vpack.c.bf16 %v1889_v54, %v1888_v8  ;;  %v3296_v12 = vpack.c.bf16 %v1921_v51, %v1920_v23  ;;  %v1907_v56 = vld [vmem:[#allocation7 + $0x128] sm:$0xff]  ;;  %v1925_v5 = vld [vmem:[#allocation7 + $0x1b8] sm:$0xff]  ;;  %v1876_v4 = vld [vmem:[#allocation7 + $0x30] sm:$0xff] }
 0x20d   : > { %3263 = vmatpush3.bf16.msra.mxu0 %v3262_v3  ;;  %3295 = vmatpush3.bf16.msra.mxu1 %v3294_v33  ;;  %v3266_v27 = vpack.c.bf16 %v1873_v41, %v1872_v32  ;;  %v3298_v25 = vpack.c.bf16 %v1905_v35, %v1904_v58  ;;  %v3268_v63 = vpack.c.bf16 %v1891_v52, %v1890_v24  ;;  %v1877_v42 = vld [vmem:[#allocation7 + $0x38] sm:$0xff]  ;;  %v1908_v28 = vld [vmem:[#allocation7 + $0x130] sm:$0xff]  ;;  %v1894_v8 = vld [vmem:[#allocation7 + $0xc0] sm:$0xff] }
 0x20e   : > { %v4597_v55 = vcvt.s32.f32 %v1649_v46  ;;  %3265 = vmatprep.subr.bf16.mxu0 %v3264_v7  ;;  %3297 = vmatprep.subr.bf16.mxu1 %v3296_v12  ;;  %v3300_v62 = vpack.c.bf16 %v1923_v19, %v1922_v37  ;;  %v3270_v46 = vpack.c.bf16 %v1875_v16, %v1874_v48  ;;  %v3302_v39 = vpack.c.bf16 %v1907_v56, %v1906_v34  ;;  %v1909_v45 = vld [vmem:[#allocation7 + $0x138] sm:$0xff]  ;;  %v1895_v33 = vld [vmem:[#allocation7 + $0xc8] sm:$0xff]  ;;  %v1926_v54 = vld [vmem:[#allocation7 + $0x1c0] sm:$0xff] }
 0x20f   : > { %1632 = vmin.xlane.f32.xlu0 %v4594_v40  ;;  %v3272_v17 = vpack.c.bf16 %v1893_v49, %v1892_v1  ;;  %v3304_v3 = vpack.c.bf16 %v1925_v5, %v1924_v2  ;;  %v1927_v23 = vld [vmem:[#allocation7 + $0x1c8] sm:$0xff]  ;;  %v3274_v51 = vpack.c.bf16 %v1877_v42, %v1876_v4  ;;  %v3306_v7 = vpack.c.bf16 %v1909_v45, %v1908_v28  ;;  %v1878_v32 = vld [vmem:[#allocation7 + $0x40] sm:$0xff]  ;;  %v1896_v24 = vld [vmem:[#allocation7 + $0xd0] sm:$0xff] }
 0x210   : > { %1652 = vmin.xlane.f32.xlu1 %v4597_v55  ;;  %v3276_v12 = vpack.c.bf16 %v1895_v33, %v1894_v8  ;;  %v1879_v41 = vld [vmem:[#allocation7 + $0x48] sm:$0xff]  ;;  %v1910_v58 = vld [vmem:[#allocation7 + $0x140] sm:$0xff]  ;;  %v1897_v52 = vld [vmem:[#allocation7 + $0xd8] sm:$0xff] }
 0x211   : > { %3267 = vmatpush3.bf16.msra.mxu0 %v3266_v27  ;;  %3299 = vmatpush3.bf16.msra.mxu1 %v3298_v25  ;;  %v3308_v27 = vpack.c.bf16 %v1927_v23, %v1926_v54  ;;  %v1911_v35 = vld [vmem:[#allocation7 + $0x148] sm:$0xff]  ;;  %v1928_v25 = vld [vmem:[#allocation7 + $0x1d0] sm:$0xff]  ;;  %v3278_v37 = vpack.c.bf16 %v1879_v41, %v1878_v32  ;;  %v3280_v48 = vpack.c.bf16 %v1897_v52, %v1896_v24  ;;  %v1881_v16 = vld [vmem:[#allocation7 + $0x58] sm:$0xff] }
 0x212   : > { %3269 = vmatprep.subr.bf16.mxu0 %v3268_v63  ;;  %3301 = vmatprep.subr.bf16.mxu1 %v3300_v62  ;;  %v1929_v63 = vld [vmem:[#allocation7 + $0x1d8] sm:$0xff]  ;;  %v3310_v19 = vpack.c.bf16 %v1911_v35, %v1910_v58  ;;  %v1880_v62 = vld [vmem:[#allocation7 + $0x50] sm:$0xff]  ;;  %v1898_v1 = vld [vmem:[#allocation7 + $0xe0] sm:$0xff] }
 0x213   : > { %v1912_v34 = vld [vmem:[#allocation7 + $0x150] sm:$0xff]  ;;  %v3312_v56 = vpack.c.bf16 %v1929_v63, %v1928_v25  ;;  %v1899_v49 = vld [vmem:[#allocation7 + $0xe8] sm:$0xff]  ;;  %v1930_v2 = vld [vmem:[#allocation7 + $0x1e0] sm:$0xff] }
 0x214   : > { %v3284_v4 = vpack.c.bf16 %v1899_v49, %v1898_v1  ;;  %v1882_v42 = vld [vmem:[#allocation7 + $0x60] sm:$0xff]  ;;  %v1915_v8 = vld [vmem:[#allocation7 + $0x168] sm:$0xff]  ;;  %v1900_v33 = vld [vmem:[#allocation7 + $0xf0] sm:$0xff] }
 0x215   : > { %3271 = vmatpush3.bf16.msra.mxu0 %v3270_v46  ;;  %3303 = vmatpush3.bf16.msra.mxu1 %v3302_v39  ;;  %v1913_v46 = vld [vmem:[#allocation7 + $0x158] sm:$0xff]  ;;  %v1931_v39 = vld [vmem:[#allocation7 + $0x1e8] sm:$0xff]  ;;  %v1914_v28 = vld [vmem:[#allocation7 + $0x160] sm:$0xff] }
 0x216   : > { %3273 = vmatprep.subr.bf16.mxu0 %v3272_v17  ;;  %3305 = vmatprep.subr.bf16.mxu1 %v3304_v3  ;;  %v3282_v17 = vpack.c.bf16 %v1881_v16, %v1880_v62  ;;  %v3314_v5 = vpack.c.bf16 %v1913_v46, %v1912_v34  ;;  %v1883_v3 = vld [vmem:[#allocation7 + $0x68] sm:$0xff]  ;;  %v3316_v45 = vpack.c.bf16 %v1931_v39, %v1930_v2  ;;  %v1901_v54 = vld [vmem:[#allocation7 + $0xf8] sm:$0xff]  ;;  %v1932_v23 = vld [vmem:[#allocation7 + $0x1f0] sm:$0xff] }
 0x217   : > { %v3288_v32 = vpack.c.bf16 %v1901_v54, %v1900_v33  ;;  %v5202_v58 = vld [vmem:[#allocation16_spill] sm:$0xff]  ;;  %v5203_v52 = vld [vmem:[#allocation17_spill] sm:$0xff]  ;;  %v5204_v63 = vld [vmem:[#allocation18_spill] sm:$0xff] }
 0x218   : > { %v5205_v62 = vld [vmem:[#allocation19_spill] sm:$0xff]  ;;  %v5206_v34 = vld [vmem:[#allocation21_spill] sm:$0xff]  ;;  %v5208_v39 = vld [vmem:[#allocation28_spill] sm:$0xff] }
 0x219   : > { %3275 = vmatpush3.bf16.msra.mxu0 %v3274_v51  ;;  %3307 = vmatpush3.bf16.msra.mxu1 %v3306_v7  ;;  %v1933_v51 = vld [vmem:[#allocation7 + $0x1f8] sm:$0xff]  ;;  %v3286_v7 = vpack.c.bf16 %v1883_v3, %v1882_v42  ;;  %v1884_v42 = vld [vmem:[#allocation7 + $0x70] sm:$0xff] }
 0x21a   : > { %3277 = vmatprep.subr.bf16.mxu0 %v3276_v12  ;;  %3309 = vmatprep.subr.bf16.mxu1 %v3308_v27  ;;  %v3318_v12 = vpack.c.bf16 %v1915_v8, %v1914_v28  ;;  %v3320_v41 = vpack.c.bf16 %v1933_v51, %v1932_v23  ;;  %v1348_v27 = vand.u32 65535, %v5202_v58  ;;  %v5207_v49 = vld [vmem:[#allocation25_spill] sm:$0xff]  ;;  %v1916_v28 = vld [vmem:[#allocation7 + $0x170] sm:$0xff]  ;;  %v1428_v23 = vand.u32 65535, %v4341_v29 }
 0x21b   : > { %v1885_v3 = vld [vmem:[#allocation7 + $0x78] sm:$0xff]  ;;  %v1448_v51 = vand.u32 65535, %v4345_v15  ;;  %v1468_v29 = vand.u32 65535, %v4411_v14  ;;  %v1488_v15 = vand.u32 65535, %v4419_v30  ;;  %v1508_v14 = vand.u32 65535, %v4494_v22 }
 0x21c   : > { %v1350_v24 = vcvt.s32.f32 %v1348_v27  ;;  %v1917_v8 = vld [vmem:[#allocation7 + $0x178] sm:$0xff]  ;;  %v1528_v30 = vand.u32 65535, %v4497_v44  ;;  %v1548_v22 = vand.u32 65535, %v4540_v26  ;;  %v1568_v44 = vand.u32 65535, %v4556_v13 }
 0x21d   : > { %3279 = vmatpush3.bf16.msra.mxu0 %v3278_v37  ;;  %3311 = vmatpush3.bf16.msra.mxu1 %v3310_v19  ;;  %v1368_v37 = vand.u32 65535, %v5204_v63  ;;  %v3322_v54 = vpack.c.bf16 %v1917_v8, %v1916_v28 }
 0x21e   : > { %3281 = vmatprep.subr.bf16.mxu0 %v3280_v48  ;;  %3313 = vmatprep.subr.bf16.mxu1 %v3312_v56  ;;  %v1388_v56 = vand.u32 65535, %v5206_v34  ;;  %v1550_v34 = vcvt.s32.f32 %v1548_v22 }
 0x21f   : > { %v1370_v48 = vcvt.s32.f32 %v1368_v37  ;;  %v1510_v37 = vcvt.s32.f32 %v1508_v14 }
 0x220   : > { %v1390_v1 = vcvt.s32.f32 %v1388_v56 }
 0x221   : > { %3283 = vmatpush3.bf16.msra.mxu0 %v3282_v17  ;;  %3315 = vmatpush3.bf16.msra.mxu1 %v3314_v5  ;;  %v1408_v17 = vand.u32 65535, %v5208_v39  ;;  %v1628_v39 = vand.u32 65535, %v4585_v50 }
 0x222   : > { %3285 = vmatprep.subr.bf16.mxu0 %v3284_v4  ;;  %3317 = vmatprep.subr.bf16.mxu1 %v3316_v45  ;;  %v3290_v45 = vpack.c.bf16 %v1885_v3, %v1884_v42 }
 0x223   : > { %v1410_v4 = vcvt.s32.f32 %v1408_v17  ;;  %v1648_v17 = vand.u32 65535, %v4591_v38  ;;  %v1630_v42 = vcvt.s32.f32 %v1628_v39 }
 0x225   : > { %3287 = vmatpush3.bf16.msra.mxu0 %v3286_v7  ;;  %3319 = vmatpush3.bf16.msra.mxu1 %v3318_v12  ;;  %v1430_v12 = vcvt.s32.f32 %v1428_v23  ;;  %v3686_v23 = vmov 0.0  }
 0x226   : > { %3289 = vmatprep.subr.bf16.mxu0 %v3288_v32  ;;  %3321 = vmatprep.subr.bf16.mxu1 %v3320_v41  ;;  %v1450_v41 = vcvt.s32.f32 %v1448_v51 }
 0x229   : > { %3291 = vmatpush3.bf16.msra.mxu0 %v3290_v45  ;;  %3323 = vmatpush3.bf16.msra.mxu1 %v3322_v54 }
 0x241   : > { %v4602_v35 = vpop.xlane.xlu0 %1352 }
 0x242   : > { %vm1354_vm14 = vcmp.eq.f32.partialorder %v5203_v52, %v4602_v35 }
 0x243   : > { %v1355_v25 = vsel %vm1354_vm14, %v1350_v24, inf  ;;  %v1470_v24 = vcvt.s32.f32 %v1468_v29  ;;  %vm2520_vm14 = vcmask 7168  }
 0x244   : > { %1356 = vmin.xlane.f32.xlu0 %v1355_v25  ;;  %v1490_v25 = vcvt.s32.f32 %v1488_v15 }
 0x248   : > { %v4607_v19 = vpop.xlane.xlu0 %1372 }
 0x249   : > { %vm1374_vm1 = vcmp.eq.f32.partialorder %v5205_v62, %v4607_v19 }
 0x24a   : > { %v1375_v16 = vsel %vm1374_vm1, %v1370_v48, inf }
 0x24b   : > { %1376 = vmin.xlane.f32.xlu1 %v1375_v16 }
 0x252   : > { %v4612_v46 = vpop.xlane.xlu1 %1392 }
 0x253   : > { %vm1394_vm15 = vcmp.eq.f32.partialorder %v5207_v49, %v4612_v46  ;;  %v1608_v49 = vand.u32 65535, %v4577_v43 }
 0x254   : > { %v1395_v2 = vsel %vm1394_vm15, %v1390_v1, inf }
 0x255   : > { %1396 = vmin.xlane.f32.xlu0 %v1395_v2 }
 0x25a   : > { %v4617_v5 = vpop.xlane.xlu1 %1412 }
 0x25b   : > { %vm1414_vm7 = vcmp.eq.f32.partialorder %v4292_v21, %v4617_v5 }
 0x25c   : > { %v1415_v33 = vsel %vm1414_vm7, %v1410_v4, inf }
 0x25d   : > { %1416 = vmin.xlane.f32.xlu1 %v1415_v33 }
 0x264   : > { %v4623_v7 = vpop.xlane.xlu0 %1432 }
 0x265   : > { %vm1434_vm2 = vcmp.eq.f32.partialorder %v4347_v60, %v4623_v7  ;;  %v4627_v32 = vpop.xlane.xlu1 %1452 }
 0x266   : > { %v1435_v21 = vsel %vm1434_vm2, %v1430_v12, inf  ;;  %vm1454_vm13 = vcmp.eq.f32.partialorder %v4355_v53, %v4627_v32 }
 0x267   : > { %1436 = vmin.xlane.f32.xlu0 %v1435_v21  ;;  %v1455_v58 = vsel %vm1454_vm13, %v1450_v41, inf  ;;  %v3687_v21 = vmov 1.0  }
 0x268   : > { %1456 = vmin.xlane.f32.xlu1 %v1455_v58 }
 0x273   : > { %v4633_v27 = vpop.xlane.xlu0 %1472 }
 0x274   : > { %vm1474_vm4 = vcmp.eq.f32.partialorder %v4421_v47, %v4633_v27  ;;  %v1530_v47 = vcvt.s32.f32 %v1528_v30 }
 0x275   : > { %v4637_v60 = vpop.xlane.xlu1 %1492  ;;  %v1475_v52 = vsel %vm1474_vm4, %v1470_v24, inf }
 0x276   : > { %1476 = vmin.xlane.f32.xlu0 %v1475_v52  ;;  %vm1494_vm3 = vcmp.eq.f32.partialorder %v4431_v57, %v4637_v60 }
 0x277   : > { %v1495_v53 = vsel %vm1494_vm3, %v1490_v25, inf  ;;  %v1399_v25 = vcvt.f32.s32 %v4612_v46 }
 0x278   : > { %1496 = vmin.xlane.f32.xlu1 %v1495_v53 }
 0x284   : > { %v4643_v63 = vpop.xlane.xlu0 %1512 }
 0x285   : > { %v4645_v48 = vpop.xlane.xlu1 %1532  ;;  %vm1514_vm5 = vcmp.eq.f32.partialorder %v4500_v6, %v4643_v63  ;;  %v1588_v6 = vand.u32 65535, %v4574_v59  ;;  %v1610_v59 = vcvt.s32.f32 %v1608_v49 }
 0x286   : > { %v1515_v62 = vsel %vm1514_vm5, %v1510_v37, inf  ;;  %vm1534_vm0 = vcmp.eq.f32.partialorder %v4506_v20, %v4645_v48  ;;  %v1570_v20 = vcvt.s32.f32 %v1568_v44  ;;  %v1419_v44 = vcvt.f32.s32 %v4617_v5 }
 0x287   : > { %1516 = vmin.xlane.f32.xlu0 %v1515_v62  ;;  %v1535_v57 = vsel %vm1534_vm0, %v1530_v47, inf  ;;  %v1590_v2 = vcvt.s32.f32 %v1588_v6 }
 0x288   : > { %1536 = vmin.xlane.f32.xlu1 %v1535_v57  ;;  %v1400_v57 = vshll.u32 %v1399_v25, 16  ;;  %v1420_v6 = vshll.u32 %v1419_v44, 16 }
 0x292   : > { %v4653_v16 = vpop.xlane.xlu0 %1552 }
 0x293   : > { %vm1554_vm12 = vcmp.eq.f32.partialorder %v4554_v10, %v4653_v16 }
 0x294   : > { %v1555_v56 = vsel %vm1554_vm12, %v1550_v34, inf }
 0x295   : > { %v4658_v1 = vpop.xlane.xlu1 %1572  ;;  %1556 = vmin.xlane.f32.xlu0 %v1555_v56 }
 0x296   : > { %vm1574_vm11 = vcmp.eq.f32.partialorder %v4572_v61, %v4658_v1 }
 0x297   : > { %v1575_v26 = vsel %vm1574_vm11, %v1570_v20, inf }
 0x298   : > { %1576 = vmin.xlane.f32.xlu1 %v1575_v26  ;;  %v4663_v13 = vpop.xlane.xlu0 %1592 }
 0x299   : > { %v4666_v10 = vpop.xlane.xlu1 %1612  ;;  %vm1594_vm6 = vcmp.eq.f32.partialorder %v4583_v36, %v4663_v13  ;;  %v1650_v36 = vcvt.s32.f32 %v1648_v17 }
 0x29a   : > { %v1595_v43 = vsel %vm1594_vm6, %v1590_v2, inf  ;;  %vm1614_vm8 = vcmp.eq.f32.partialorder %v4587_v18, %v4666_v10  ;;  %v1359_v18 = vcvt.f32.s32 %v4602_v35 }
 0x29b   : > { %1596 = vmin.xlane.f32.xlu0 %v1595_v43  ;;  %v1615_v61 = vsel %vm1614_vm8, %v1610_v59, inf }
 0x29c   : > { %1616 = vmin.xlane.f32.xlu1 %v1615_v61  ;;  %v4673_v4 = vpop.xlane.xlu0 %1632  ;;  %v1360_v45 = vshll.u32 %v1359_v18, 16  ;;  %v1459_v18 = vcvt.f32.s32 %v4627_v32 }
 0x29d   : > { %v4675_v50 = vpop.xlane.xlu1 %1652  ;;  %vm1634_vm9 = vcmp.eq.f32.partialorder %v4594_v40, %v4673_v4  ;;  %v1379_v40 = vcvt.f32.s32 %v4607_v19 }
 0x29e   : > { %v1635_v3 = vsel %vm1634_vm9, %v1630_v42, inf  ;;  %vm1654_vm10 = vcmp.eq.f32.partialorder %v4597_v55, %v4675_v50  ;;  %v1439_v42 = vcvt.f32.s32 %v4623_v7 }
 0x29f   : > { %1636 = vmin.xlane.f32.xlu0 %v1635_v3  ;;  %v1655_v38 = vsel %vm1654_vm10, %v1650_v36, inf  ;;  %v1380_v54 = vshll.u32 %v1379_v40, 16 }
 0x2a0   : > { %1656 = vmin.xlane.f32.xlu1 %v1655_v38  ;;  %v1440_v40 = vshll.u32 %v1439_v42, 16 }
 0x2d1   : > { %v1357_v28 = vpop.xlane.xlu0 %1356 }
 0x2d2   : > { %v1358_v8 = vcvt.f32.s32 %v1357_v28 }
 0x2d4   : > { %v1361_v33 = vadd.s32 %v1360_v45, %v1358_v8 }
 0x2d6   : > { %v1662_v55 = vand.u32 511, %v1361_v33 }
 0x2d8   : > { %2521 = vst.msk [vmem:[%s4687_s21] sm:$0xff] %vm2520_vm14, %v1662_v55  ;;  %v1377_v35 = vpop.xlane.xlu1 %1376  ;;  %vm1678_vm1 = vcmp.eq.s32.totalorder %v3952_v0, %v1662_v55  ;;  %vm1679_vm15 = vcmp.eq.s32.totalorder %v3967_v11, %v1662_v55  ;;  %vm1680_vm7 = vcmp.eq.s32.totalorder %v3963_v9, %v1662_v55  ;;  %vm1681_vm2 = vcmp.eq.s32.totalorder %v3975_v31, %v1662_v55 }
 0x2d9   : > { %v1378_v19 = vcvt.f32.s32 %v1377_v35  ;;  %v2829_v51 = vsel %vm1678_vm1, 1.0, %v3686_v23  ;;  %v2830_v12 = vsel %vm1679_vm15, 1.0, %v3686_v23  ;;  %2893 = vmatprep.mubr.msk.f32.mxu0 %vm1679_vm15, %v3687_v21  ;;  %v2831_v41 = vsel %vm1680_vm7, 1.0, %v3686_v23  ;;  %2925 = vmatprep.mubr.msk.f32.mxu1 %vm1681_vm2, %v3687_v21 }
 0x2da   : > { %v3001_v58 = vpack.c.bf16 %v2830_v12, %v2829_v51  ;;  %v2832_v29 = vsel %vm1681_vm2, 1.0, %v3686_v23  ;;  %2894 = vmatmul.mubr.msk.f32.vlgmr.msra.gmra.mrb[32].mxu0 %vm1678_vm1, %v3687_v21  ;;  %2926 = vmatmul.mubr.msk.f32.vlgmr.msra.gmra.mrb[32].mxu1 %vm1680_vm7, %v3687_v21 }
 0x2db   : > { %v1381_v15 = vadd.s32 %v1380_v54, %v1378_v19  ;;  %v3002_v24 = vpack.c.bf16 %v2832_v29, %v2831_v41  ;;  %v1460_v54 = vshll.u32 %v1459_v18, 16  ;;  %v1539_v18 = vcvt.f32.s32 %v4645_v48 }
 0x2dc   : > { %2488 = vst [vmem:[%s4704_s11] sm:$0xff] %v3001_v58 }
 0x2dd   : > { %v1663_v52 = vand.u32 511, %v1381_v15  ;;  %2489 = vst [vmem:[%s4704_s11 + $0x8] sm:$0xff] %v3002_v24 }
 0x2df   : > { %2522 = vst.msk [vmem:[%s4687_s21 + $0x8] sm:$0xff] %vm2520_vm14, %v1663_v52  ;;  %vm1683_vm13 = vcmp.eq.s32.totalorder %v3967_v11, %v1663_v52  ;;  %vm1685_vm4 = vcmp.eq.s32.totalorder %v3975_v31, %v1663_v52  ;;  %vm1682_vm3 = vcmp.eq.s32.totalorder %v3952_v0, %v1663_v52  ;;  %vm1684_vm5 = vcmp.eq.s32.totalorder %v3963_v9, %v1663_v52 }
 0x2e0   : > { %v2834_v53 = vsel %vm1683_vm13, 1.0, %v3686_v23  ;;  %2895 = vmatprep.mubr.msk.f32.mxu0 %vm1683_vm13, %v3687_v21  ;;  %v2836_v14 = vsel %vm1685_vm4, 1.0, %v3686_v23  ;;  %2927 = vmatprep.mubr.msk.f32.mxu1 %vm1685_vm4, %v3687_v21  ;;  %v2833_v46 = vsel %vm1682_vm3, 1.0, %v3686_v23  ;;  %v2835_v30 = vsel %vm1684_vm5, 1.0, %v3686_v23 }
 0x2e1   : > { %2896 = vmatmul.mubr.msk.f32.gmra.mrb[34].mxu0 %vm1682_vm3, %v3687_v21  ;;  %v3003_v47 = vpack.c.bf16 %v2834_v53, %v2833_v46  ;;  %2928 = vmatmul.mubr.msk.f32.gmra.mrb[34].mxu1 %vm1684_vm5, %v3687_v21  ;;  %v3004_v62 = vpack.c.bf16 %v2836_v14, %v2835_v30  ;;  %v1479_v46 = vcvt.f32.s32 %v4633_v27 }
 0x2e2   : > { %v1397_v37 = vpop.xlane.xlu0 %1396 }
 0x2e3   : > { %v1398_v22 = vcvt.f32.s32 %v1397_v37  ;;  %2490 = vst [vmem:[%s4704_s11 + $0x10] sm:$0xff] %v3003_v47  ;;  %2491 = vst [vmem:[%s4704_s11 + $0x18] sm:$0xff] %v3004_v62  ;;  %v1499_v62 = vcvt.f32.s32 %v4637_v60 }
 0x2e5   : > { %v1401_v34 = vadd.s32 %v1400_v57, %v1398_v22  ;;  %v1480_v22 = vshll.u32 %v1479_v46, 16  ;;  %v1579_v46 = vcvt.f32.s32 %v4658_v1 }
 0x2e7   : > { %v1664_v56 = vand.u32 511, %v1401_v34 }
 0x2e9   : > { %2523 = vst.msk [vmem:[%s4687_s21 + $0x10] sm:$0xff] %vm2520_vm14, %v1664_v56  ;;  %vm1687_vm0 = vcmp.eq.s32.totalorder %v3967_v11, %v1664_v56  ;;  %vm1689_vm12 = vcmp.eq.s32.totalorder %v3975_v31, %v1664_v56  ;;  %vm1686_vm11 = vcmp.eq.s32.totalorder %v3952_v0, %v1664_v56  ;;  %vm1688_vm6 = vcmp.eq.s32.totalorder %v3963_v9, %v1664_v56 }
 0x2ea   : > { %v1417_v20 = vpop.xlane.xlu1 %1416  ;;  %v2838_v5 = vsel %vm1687_vm0, 1.0, %v3686_v23  ;;  %2897 = vmatprep.mubr.msk.f32.mxu0 %vm1687_vm0, %v3687_v21  ;;  %v2840_v26 = vsel %vm1689_vm12, 1.0, %v3686_v23  ;;  %2929 = vmatprep.mubr.msk.f32.mxu1 %vm1689_vm12, %v3687_v21  ;;  %v2837_v2 = vsel %vm1686_vm11, 1.0, %v3686_v23  ;;  %v2839_v59 = vsel %vm1688_vm6, 1.0, %v3686_v23 }
 0x2eb   : > { %v1418_v49 = vcvt.f32.s32 %v1417_v20  ;;  %2898 = vmatmul.mubr.msk.f32.gmra.mrb[36].mxu0 %vm1686_vm11, %v3687_v21  ;;  %v3005_v39 = vpack.c.bf16 %v2838_v5, %v2837_v2  ;;  %2930 = vmatmul.mubr.msk.f32.gmra.mrb[36].mxu1 %vm1688_vm6, %v3687_v21  ;;  %v3006_v43 = vpack.c.bf16 %v2840_v26, %v2839_v59  ;;  %v1500_v56 = vshll.u32 %v1499_v62, 16 }
 0x2ec   : > { %v1619_v62 = vcvt.f32.s32 %v4666_v10 }
 0x2ed   : > { %v1421_v17 = vadd.s32 %v1420_v6, %v1418_v49  ;;  %2492 = vst [vmem:[%s4704_s11 + $0x20] sm:$0xff] %v3005_v39  ;;  %2493 = vst [vmem:[%s4704_s11 + $0x28] sm:$0xff] %v3006_v43 }
 0x2ef   : > { %v1665_v61 = vand.u32 511, %v1421_v17 }
 0x2f1   : > { %2524 = vst.msk [vmem:[%s4687_s21 + $0x18] sm:$0xff] %vm2520_vm14, %v1665_v61  ;;  %vm1691_vm8 = vcmp.eq.s32.totalorder %v3967_v11, %v1665_v61  ;;  %vm1693_vm9 = vcmp.eq.s32.totalorder %v3975_v31, %v1665_v61  ;;  %vm1690_vm10 = vcmp.eq.s32.totalorder %v3952_v0, %v1665_v61  ;;  %vm1692_vm1 = vcmp.eq.s32.totalorder %v3963_v9, %v1665_v61 }
 0x2f2   : > { %v2842_v36 = vsel %vm1691_vm8, 1.0, %v3686_v23  ;;  %2899 = vmatprep.mubr.msk.f32.mxu0 %vm1691_vm8, %v3687_v21  ;;  %v2844_v3 = vsel %vm1693_vm9, 1.0, %v3686_v23  ;;  %2931 = vmatprep.mubr.msk.f32.mxu1 %vm1693_vm9, %v3687_v21  ;;  %v2841_v7 = vsel %vm1690_vm10, 1.0, %v3686_v23  ;;  %v2843_v38 = vsel %vm1692_vm1, 1.0, %v3686_v23 }
 0x2f3   : > { %2900 = vmatmul.mubr.msk.f32.gmra.mrb[38].mxu0 %vm1690_vm10, %v3687_v21  ;;  %v3007_v28 = vpack.c.bf16 %v2842_v36, %v2841_v7  ;;  %2932 = vmatmul.mubr.msk.f32.gmra.mrb[38].mxu1 %vm1692_vm1, %v3687_v21  ;;  %v3008_v45 = vpack.c.bf16 %v2844_v3, %v2843_v38  ;;  %v1519_v38 = vcvt.f32.s32 %v4643_v63 }
 0x2f4   : > { %v1437_v8 = vpop.xlane.xlu0 %1436 }
 0x2f5   : > { %v1438_v33 = vcvt.f32.s32 %v1437_v8  ;;  %2494 = vst [vmem:[%s4704_s11 + $0x30] sm:$0xff] %v3007_v28  ;;  %2495 = vst [vmem:[%s4704_s11 + $0x38] sm:$0xff] %v3008_v45  ;;  %v1457_v55 = vpop.xlane.xlu1 %1456  ;;  %v1520_v45 = vshll.u32 %v1519_v38, 16 }
 0x2f6   : > { %v1458_v19 = vcvt.f32.s32 %v1457_v55 }
 0x2f7   : > { %v1441_v35 = vadd.s32 %v1440_v40, %v1438_v33  ;;  %v1540_v33 = vshll.u32 %v1539_v18, 16 }
 0x2f8   : > { %v1461_v12 = vadd.s32 %v1460_v54, %v1458_v19 }
 0x2f9   : > { %v1666_v51 = vand.u32 511, %v1441_v35 }
 0x2fa   : > { %v1667_v32 = vand.u32 511, %v1461_v12 }
 0x2fb   : > { %2525 = vst.msk [vmem:[%s4687_s21 + $0x20] sm:$0xff] %vm2520_vm14, %v1666_v51  ;;  %vm1695_vm15 = vcmp.eq.s32.totalorder %v3967_v11, %v1666_v51  ;;  %vm1697_vm7 = vcmp.eq.s32.totalorder %v3975_v31, %v1666_v51  ;;  %vm1694_vm2 = vcmp.eq.s32.totalorder %v3952_v0, %v1666_v51  ;;  %vm1696_vm13 = vcmp.eq.s32.totalorder %v3963_v9, %v1666_v51 }
 0x2fc   : > { %v2846_v41 = vsel %vm1695_vm15, 1.0, %v3686_v23  ;;  %2901 = vmatprep.mubr.msk.f32.mxu0 %vm1695_vm15, %v3687_v21  ;;  %v2848_v58 = vsel %vm1697_vm7, 1.0, %v3686_v23  ;;  %2933 = vmatprep.mubr.msk.f32.mxu1 %vm1697_vm7, %v3687_v21  ;;  %v2845_v29 = vsel %vm1694_vm2, 1.0, %v3686_v23  ;;  %2526 = vst.msk [vmem:[%s4687_s21 + $0x28] sm:$0xff] %vm2520_vm14, %v1667_v32  ;;  %v2847_v24 = vsel %vm1696_vm13, 1.0, %v3686_v23 }
 0x2fd   : > { %2902 = vmatmul.mubr.msk.f32.gmra.mrb[40].mxu0 %vm1694_vm2, %v3687_v21  ;;  %v3009_v15 = vpack.c.bf16 %v2846_v41, %v2845_v29  ;;  %2934 = vmatmul.mubr.msk.f32.gmra.mrb[40].mxu1 %vm1696_vm13, %v3687_v21  ;;  %vm1699_vm4 = vcmp.eq.s32.totalorder %v3967_v11, %v1667_v32  ;;  %vm1701_vm3 = vcmp.eq.s32.totalorder %v3975_v31, %v1667_v32 }
 0x2fe   : > { %v3010_v52 = vpack.c.bf16 %v2848_v58, %v2847_v24  ;;  %v2850_v25 = vsel %vm1699_vm4, 1.0, %v3686_v23  ;;  %2903 = vmatprep.mubr.msk.f32.mxu0 %vm1699_vm4, %v3687_v21  ;;  %v2852_v53 = vsel %vm1701_vm3, 1.0, %v3686_v23  ;;  %2935 = vmatprep.mubr.msk.f32.mxu1 %vm1701_vm3, %v3687_v21  ;;  %vm1698_vm5 = vcmp.eq.s32.totalorder %v3952_v0, %v1667_v32 }
 0x2ff   : > { %2496 = vst [vmem:[%s4704_s11 + $0x40] sm:$0xff] %v3009_v15  ;;  %v2849_v14 = vsel %vm1698_vm5, 1.0, %v3686_v23  ;;  %vm1700_vm0 = vcmp.eq.s32.totalorder %v3963_v9, %v1667_v32  ;;  %v1559_v15 = vcvt.f32.s32 %v4653_v16 }
 0x300   : > { %2497 = vst [vmem:[%s4704_s11 + $0x48] sm:$0xff] %v3010_v52  ;;  %v3011_v30 = vpack.c.bf16 %v2850_v25, %v2849_v14  ;;  %v2851_v37 = vsel %vm1700_vm0, 1.0, %v3686_v23 }
 0x301   : > { %2904 = vmatmul.mubr.msk.f32.gmra.mrb[42].mxu0 %vm1698_vm5, %v3687_v21  ;;  %2936 = vmatmul.mubr.msk.f32.gmra.mrb[42].mxu1 %vm1700_vm0, %v3687_v21  ;;  %v3012_v47 = vpack.c.bf16 %v2852_v53, %v2851_v37  ;;  %v1560_v16 = vshll.u32 %v1559_v15, 16  ;;  %v1599_v37 = vcvt.f32.s32 %v4663_v13 }
 0x302   : > { %2498 = vst [vmem:[%s4704_s11 + $0x50] sm:$0xff] %v3011_v30 }
 0x303   : > { %v1477_v57 = vpop.xlane.xlu0 %1476  ;;  %2499 = vst [vmem:[%s4704_s11 + $0x58] sm:$0xff] %v3012_v47 }
 0x304   : > { %v1478_v44 = vcvt.f32.s32 %v1477_v57  ;;  %v1639_v57 = vcvt.f32.s32 %v4673_v4 }
 0x305   : > { %v1497_v34 = vpop.xlane.xlu1 %1496 }
 0x306   : > { %v1481_v27 = vadd.s32 %v1480_v22, %v1478_v44  ;;  %v1498_v6 = vcvt.f32.s32 %v1497_v34  ;;  %v1659_v22 = vcvt.f32.s32 %v4675_v50 }
 0x308   : > { %v1668_v20 = vand.u32 511, %v1481_v27  ;;  %v1501_v49 = vadd.s32 %v1500_v56, %v1498_v6  ;;  %v1580_v56 = vshll.u32 %v1579_v46, 16  ;;  %v1600_v6 = vshll.u32 %v1599_v37, 16 }
 0x30a   : > { %2527 = vst.msk [vmem:[%s4687_s21 + $0x30] sm:$0xff] %vm2520_vm14, %v1668_v20  ;;  %v1669_v5 = vand.u32 511, %v1501_v49  ;;  %vm1703_vm12 = vcmp.eq.s32.totalorder %v3967_v11, %v1668_v20  ;;  %vm1705_vm11 = vcmp.eq.s32.totalorder %v3975_v31, %v1668_v20  ;;  %vm1702_vm6 = vcmp.eq.s32.totalorder %v3952_v0, %v1668_v20 }
 0x30b   : > { %v2854_v60 = vsel %vm1703_vm12, 1.0, %v3686_v23  ;;  %2905 = vmatprep.mubr.msk.f32.mxu0 %vm1703_vm12, %v3687_v21  ;;  %v2856_v26 = vsel %vm1705_vm11, 1.0, %v3686_v23  ;;  %2937 = vmatprep.mubr.msk.f32.mxu1 %vm1705_vm11, %v3687_v21  ;;  %v2853_v2 = vsel %vm1702_vm6, 1.0, %v3686_v23  ;;  %vm1704_vm8 = vcmp.eq.s32.totalorder %v3963_v9, %v1668_v20 }
 0x30c   : > { %2528 = vst.msk [vmem:[%s4687_s21 + $0x38] sm:$0xff] %vm2520_vm14, %v1669_v5  ;;  %2906 = vmatmul.mubr.msk.f32.gmra.mrb[44].mxu0 %vm1702_vm6, %v3687_v21  ;;  %v3013_v39 = vpack.c.bf16 %v2854_v60, %v2853_v2  ;;  %v2855_v59 = vsel %vm1704_vm8, 1.0, %v3686_v23  ;;  %2938 = vmatmul.mubr.msk.f32.gmra.mrb[44].mxu1 %vm1704_vm8, %v3687_v21  ;;  %vm1707_vm9 = vcmp.eq.s32.totalorder %v3967_v11, %v1669_v5  ;;  %v1620_v20 = vshll.u32 %v1619_v62, 16 }
 0x30d   : > { %vm1709_vm10 = vcmp.eq.s32.totalorder %v3975_v31, %v1669_v5  ;;  %v3014_v17 = vpack.c.bf16 %v2856_v26, %v2855_v59  ;;  %v2858_v43 = vsel %vm1707_vm9, 1.0, %v3686_v23  ;;  %2907 = vmatprep.mubr.msk.f32.mxu0 %vm1707_vm9, %v3687_v21  ;;  %vm1706_vm1 = vcmp.eq.s32.totalorder %v3952_v0, %v1669_v5 }
 0x30e   : > { %v2860_v61 = vsel %vm1709_vm10, 1.0, %v3686_v23  ;;  %2939 = vmatprep.mubr.msk.f32.mxu1 %vm1709_vm10, %v3687_v21  ;;  %2500 = vst [vmem:[%s4704_s11 + $0x60] sm:$0xff] %v3013_v39  ;;  %v2857_v42 = vsel %vm1706_vm1, 1.0, %v3686_v23  ;;  %vm1708_vm15 = vcmp.eq.s32.totalorder %v3963_v9, %v1669_v5  ;;  %v1640_v49 = vshll.u32 %v1639_v57, 16 }
 0x30f   : > { %2501 = vst [vmem:[%s4704_s11 + $0x68] sm:$0xff] %v3014_v17  ;;  %v3015_v36 = vpack.c.bf16 %v2858_v43, %v2857_v42  ;;  %v2859_v3 = vsel %vm1708_vm15, 1.0, %v3686_v23  ;;  %v4866_v5 = vshll.u32 %v1659_v22, 16 }
 0x310   : > { %2908 = vmatmul.mubr.msk.f32.gmra.mrb[46].mxu0 %vm1706_vm1, %v3687_v21  ;;  %2940 = vmatmul.mubr.msk.f32.gmra.mrb[46].mxu1 %vm1708_vm15, %v3687_v21  ;;  %v3016_v7 = vpack.c.bf16 %v2860_v61, %v2859_v3 }
 0x311   : > { %2502 = vst [vmem:[%s4704_s11 + $0x70] sm:$0xff] %v3015_v36 }
 0x312   : > { %2503 = vst [vmem:[%s4704_s11 + $0x78] sm:$0xff] %v3016_v7 }
 0x314   : > { %v1517_v28 = vpop.xlane.xlu0 %1516 }
 0x315   : > { %v1518_v8 = vcvt.f32.s32 %v1517_v28  ;;  %v1537_v40 = vpop.xlane.xlu1 %1536 }
 0x316   : > { %v1538_v55 = vcvt.f32.s32 %v1537_v40 }
 0x317   : > { %v1521_v54 = vadd.s32 %v1520_v45, %v1518_v8 }
 0x318   : > { %v1541_v35 = vadd.s32 %v1540_v33, %v1538_v55 }
 0x319   : > { %v1670_v19 = vand.u32 511, %v1521_v54 }
 0x31a   : > { %v1671_v51 = vand.u32 511, %v1541_v35 }
 0x31b   : > { %2529 = vst.msk [vmem:[%s4687_s21 + $0x40] sm:$0xff] %vm2520_vm14, %v1670_v19  ;;  %vm1711_vm7 = vcmp.eq.s32.totalorder %v3967_v11, %v1670_v19  ;;  %vm1713_vm2 = vcmp.eq.s32.totalorder %v3975_v31, %v1670_v19  ;;  %vm1710_vm13 = vcmp.eq.s32.totalorder %v3952_v0, %v1670_v19  ;;  %vm1712_vm4 = vcmp.eq.s32.totalorder %v3963_v9, %v1670_v19 }
 0x31c   : > { %2530 = vst.msk [vmem:[%s4687_s21 + $0x48] sm:$0xff] %vm2520_vm14, %v1671_v51  ;;  %v2862_v63 = vsel %vm1711_vm7, 1.0, %v3686_v23  ;;  %2909 = vmatprep.mubr.msk.f32.mxu0 %vm1711_vm7, %v3687_v21  ;;  %v2864_v48 = vsel %vm1713_vm2, 1.0, %v3686_v23  ;;  %2941 = vmatprep.mubr.msk.f32.mxu1 %vm1713_vm2, %v3687_v21  ;;  %v2861_v12 = vsel %vm1710_vm13, 1.0, %v3686_v23  ;;  %v2863_v32 = vsel %vm1712_vm4, 1.0, %v3686_v23 }
 0x31d   : > { %2910 = vmatmul.mubr.msk.f32.gmra.mrb[48].mxu0 %vm1710_vm13, %v3687_v21  ;;  %v3017_v41 = vpack.c.bf16 %v2862_v63, %v2861_v12  ;;  %2942 = vmatmul.mubr.msk.f32.gmra.mrb[48].mxu1 %vm1712_vm4, %v3687_v21  ;;  %v3018_v58 = vpack.c.bf16 %v2864_v48, %v2863_v32  ;;  %vm1715_vm3 = vcmp.eq.s32.totalorder %v3967_v11, %v1671_v51 }
 0x31e   : > { %v2866_v29 = vsel %vm1715_vm3, 1.0, %v3686_v23  ;;  %2911 = vmatprep.mubr.msk.f32.mxu0 %vm1715_vm3, %v3687_v21  ;;  %vm1717_vm5 = vcmp.eq.s32.totalorder %v3975_v31, %v1671_v51  ;;  %vm1714_vm0 = vcmp.eq.s32.totalorder %v3952_v0, %v1671_v51  ;;  %vm1716_vm12 = vcmp.eq.s32.totalorder %v3963_v9, %v1671_v51 }
 0x31f   : > { %2504 = vst [vmem:[%s4704_s11 + $0x80] sm:$0xff] %v3017_v41  ;;  %2505 = vst [vmem:[%s4704_s11 + $0x88] sm:$0xff] %v3018_v58  ;;  %v2868_v24 = vsel %vm1717_vm5, 1.0, %v3686_v23  ;;  %2943 = vmatprep.mubr.msk.f32.mxu1 %vm1717_vm5, %v3687_v21  ;;  %v2865_v52 = vsel %vm1714_vm0, 1.0, %v3686_v23  ;;  %v2867_v25 = vsel %vm1716_vm12, 1.0, %v3686_v23 }
 0x320   : > { %v3019_v53 = vpack.c.bf16 %v2866_v29, %v2865_v52  ;;  %v3020_v14 = vpack.c.bf16 %v2868_v24, %v2867_v25 }
 0x321   : > { %2912 = vmatmul.mubr.msk.f32.gmra.mrb[50].mxu0 %vm1714_vm0, %v3687_v21  ;;  %2944 = vmatmul.mubr.msk.f32.gmra.mrb[50].mxu1 %vm1716_vm12, %v3687_v21 }
 0x322   : > { %v1557_v30 = vpop.xlane.xlu0 %1556  ;;  %2506 = vst [vmem:[%s4704_s11 + $0x90] sm:$0xff] %v3019_v53  ;;  %2507 = vst [vmem:[%s4704_s11 + $0x98] sm:$0xff] %v3020_v14 }
 0x323   : > { %v1558_v47 = vcvt.f32.s32 %v1557_v30 }
 0x325   : > { %v1561_v44 = vadd.s32 %v1560_v16, %v1558_v47  ;;  %v1577_v34 = vpop.xlane.xlu1 %1576 }
 0x326   : > { %v1578_v27 = vcvt.f32.s32 %v1577_v34 }
 0x327   : > { %v1672_v1 = vand.u32 511, %v1561_v44 }
 0x328   : > { %v1581_v60 = vadd.s32 %v1580_v56, %v1578_v27  ;;  %v1597_v13 = vpop.xlane.xlu0 %1596 }
 0x329   : > { %2531 = vst.msk [vmem:[%s4687_s21 + $0x50] sm:$0xff] %vm2520_vm14, %v1672_v1  ;;  %v1598_v26 = vcvt.f32.s32 %v1597_v13  ;;  %vm1719_vm11 = vcmp.eq.s32.totalorder %v3967_v11, %v1672_v1  ;;  %vm1721_vm6 = vcmp.eq.s32.totalorder %v3975_v31, %v1672_v1  ;;  %vm1718_vm8 = vcmp.eq.s32.totalorder %v3952_v0, %v1672_v1  ;;  %v1617_v10 = vpop.xlane.xlu1 %1616 }
 0x32a   : > { %v1673_v4 = vand.u32 511, %v1581_v60  ;;  %v2870_v50 = vsel %vm1719_vm11, 1.0, %v3686_v23  ;;  %2913 = vmatprep.mubr.msk.f32.mxu0 %vm1719_vm11, %v3687_v21  ;;  %v2872_v2 = vsel %vm1721_vm6, 1.0, %v3686_v23  ;;  %2945 = vmatprep.mubr.msk.f32.mxu1 %vm1721_vm6, %v3687_v21  ;;  %v2869_v39 = vsel %vm1718_vm8, 1.0, %v3686_v23 }
 0x32b   : > { %v1601_v59 = vadd.s32 %v1600_v6, %v1598_v26  ;;  %2914 = vmatmul.mubr.msk.f32.gmra.mrb[52].mxu0 %vm1718_vm8, %v3687_v21  ;;  %v3021_v17 = vpack.c.bf16 %v2870_v50, %v2869_v39  ;;  %vm1720_vm9 = vcmp.eq.s32.totalorder %v3963_v9, %v1672_v1  ;;  %v1618_v43 = vcvt.f32.s32 %v1617_v10  ;;  %v3445_v10 = vld [vmem:[%s3921_s18] sm:$0xff] }
 0x32c   : > { %2532 = vst.msk [vmem:[%s4687_s21 + $0x58] sm:$0xff] %vm2520_vm14, %v1673_v4  ;;  %v2871_v61 = vsel %vm1720_vm9, 1.0, %v3686_v23  ;;  %2946 = vmatmul.mubr.msk.f32.gmra.mrb[52].mxu1 %vm1720_vm9, %v3687_v21  ;;  %vm1723_vm10 = vcmp.eq.s32.totalorder %v3967_v11, %v1673_v4  ;;  %vm1725_vm1 = vcmp.eq.s32.totalorder %v3975_v31, %v1673_v4  ;;  %vm1722_vm15 = vcmp.eq.s32.totalorder %v3952_v0, %v1673_v4  ;;  %v1637_v42 = vpop.xlane.xlu0 %1636 }
 0x32d   : > { %v1674_v36 = vand.u32 511, %v1601_v59  ;;  %2508 = vst [vmem:[%s4704_s11 + $0xa0] sm:$0xff] %v3021_v17  ;;  %v3022_v3 = vpack.c.bf16 %v2872_v2, %v2871_v61  ;;  %v2874_v7 = vsel %vm1723_vm10, 1.0, %v3686_v23  ;;  %2915 = vmatprep.mubr.msk.f32.mxu0 %vm1723_vm10, %v3687_v21  ;;  %v2876_v38 = vsel %vm1725_vm1, 1.0, %v3686_v23  ;;  %2947 = vmatprep.mubr.msk.f32.mxu1 %vm1725_vm1, %v3687_v21  ;;  %v1657_v8 = vpop.xlane.xlu1 %1656  ;;  %v3446_v2 = vld [vmem:[%s3921_s18 + $0x8] sm:$0xff] }
 0x32e   : > { %v1621_v18 = vadd.s32 %v1620_v20, %v1618_v43  ;;  %v2873_v28 = vsel %vm1722_vm15, 1.0, %v3686_v23  ;;  %vm1724_vm7 = vcmp.eq.s32.totalorder %v3963_v9, %v1673_v4  ;;  %v1638_v45 = vcvt.f32.s32 %v1637_v42 }
 0x32f   : > { %2533 = vst.msk [vmem:[%s4687_s21 + $0x60] sm:$0xff] %vm2520_vm14, %v1674_v36  ;;  %2509 = vst [vmem:[%s4704_s11 + $0xa8] sm:$0xff] %v3022_v3  ;;  %2916 = vmatmul.mubr.msk.f32.gmra.mrb[54].mxu0 %vm1722_vm15, %v3687_v21  ;;  %v3023_v40 = vpack.c.bf16 %v2874_v7, %v2873_v28  ;;  %v2875_v33 = vsel %vm1724_vm7, 1.0, %v3686_v23  ;;  %vm1727_vm2 = vcmp.eq.s32.totalorder %v3967_v11, %v1674_v36  ;;  %v1658_v63 = vcvt.f32.s32 %v1657_v8  ;;  %v3447_v28 = vld [vmem:[%s3921_s18 + $0x10] sm:$0xff] }
 0x330   : > { %vm1729_vm13 = vcmp.eq.s32.totalorder %v3975_v31, %v1674_v36  ;;  %v1675_v55 = vand.u32 511, %v1621_v18  ;;  %2948 = vmatmul.mubr.msk.f32.gmra.mrb[54].mxu1 %vm1724_vm7, %v3687_v21  ;;  %v3024_v54 = vpack.c.bf16 %v2876_v38, %v2875_v33  ;;  %v1641_v35 = vadd.s32 %v1640_v49, %v1638_v45  ;;  %2917 = vmatprep.mubr.msk.f32.mxu0 %vm1727_vm2, %v3687_v21 }
 0x331   : > { %v2878_v19 = vsel %vm1727_vm2, 1.0, %v3686_v23  ;;  %2510 = vst [vmem:[%s4704_s11 + $0xb0] sm:$0xff] %v3023_v40  ;;  %v2880_v51 = vsel %vm1729_vm13, 1.0, %v3686_v23  ;;  %2949 = vmatprep.mubr.msk.f32.mxu1 %vm1729_vm13, %v3687_v21  ;;  %vm1726_vm4 = vcmp.eq.s32.totalorder %v3952_v0, %v1674_v36  ;;  %vm1728_vm3 = vcmp.eq.s32.totalorder %v3963_v9, %v1674_v36 }
 0x332   : > { %2534 = vst.msk [vmem:[%s4687_s21 + $0x68] sm:$0xff] %vm2520_vm14, %v1675_v55  ;;  %2511 = vst [vmem:[%s4704_s11 + $0xb8] sm:$0xff] %v3024_v54  ;;  %v1676_v48 = vand.u32 511, %v1641_v35  ;;  %v2877_v12 = vsel %vm1726_vm4, 1.0, %v3686_v23  ;;  %v2879_v32 = vsel %vm1728_vm3, 1.0, %v3686_v23  ;;  %vm1731_vm5 = vcmp.eq.s32.totalorder %v3967_v11, %v1675_v55 }
 0x333   : > { %2918 = vmatmul.mubr.msk.f32.gmra.mrb[56].mxu0 %vm1726_vm4, %v3687_v21  ;;  %v3025_v41 = vpack.c.bf16 %v2878_v19, %v2877_v12  ;;  %v3026_v58 = vpack.c.bf16 %v2880_v51, %v2879_v32  ;;  %v2882_v29 = vsel %vm1731_vm5, 1.0, %v3686_v23  ;;  %vm1733_vm0 = vcmp.eq.s32.totalorder %v3975_v31, %v1675_v55 }
 0x334   : > { %2535 = vst.msk [vmem:[%s4687_s21 + $0x70] sm:$0xff] %vm2520_vm14, %v1676_v48  ;;  %2950 = vmatmul.mubr.msk.f32.gmra.mrb[56].mxu1 %vm1728_vm3, %v3687_v21  ;;  %2919 = vmatprep.mubr.msk.f32.mxu0 %vm1731_vm5, %v3687_v21  ;;  %v2884_v15 = vsel %vm1733_vm0, 1.0, %v3686_v23  ;;  %v1661_v24 = vadd.s32 %v4866_v5, %v1658_v63  ;;  %vm1730_vm12 = vcmp.eq.s32.totalorder %v3952_v0, %v1675_v55 }
 0x335   : > { %vm1732_vm11 = vcmp.eq.s32.totalorder %v3963_v9, %v1675_v55  ;;  %2512 = vst [vmem:[%s4704_s11 + $0xc0] sm:$0xff] %v3025_v41  ;;  %2513 = vst [vmem:[%s4704_s11 + $0xc8] sm:$0xff] %v3026_v58  ;;  %2951 = vmatprep.mubr.msk.f32.mxu1 %vm1733_vm0, %v3687_v21  ;;  %v2881_v52 = vsel %vm1730_vm12, 1.0, %v3686_v23  ;;  %vm1735_vm6 = vcmp.eq.s32.totalorder %v3967_v11, %v1676_v48 }
 0x336   : > { %v2883_v25 = vsel %vm1732_vm11, 1.0, %v3686_v23  ;;  %vm1737_vm8 = vcmp.eq.s32.totalorder %v3975_v31, %v1676_v48  ;;  %v1677_v53 = vand.u32 511, %v1661_v24  ;;  %v3027_v14 = vpack.c.bf16 %v2882_v29, %v2881_v52 }
 0x337   : > { %v3028_v46 = vpack.c.bf16 %v2884_v15, %v2883_v25  ;;  %v2886_v30 = vsel %vm1735_vm6, 1.0, %v3686_v23  ;;  %2920 = vmatmul.mubr.msk.f32.gmra.mrb[58].mxu0 %vm1730_vm12, %v3687_v21  ;;  %v2888_v16 = vsel %vm1737_vm8, 1.0, %v3686_v23  ;;  %vm1734_vm9 = vcmp.eq.s32.totalorder %v3952_v0, %v1676_v48 }
 0x338   : > { %vm1736_vm10 = vcmp.eq.s32.totalorder %v3963_v9, %v1676_v48  ;;  %2536 = vst.msk [vmem:[%s4687_s21 + $0x78] sm:$0xff] %vm2520_vm14, %v1677_v53  ;;  %2514 = vst [vmem:[%s4704_s11 + $0xd0] sm:$0xff] %v3027_v14  ;;  %2952 = vmatmul.mubr.msk.f32.gmra.mrb[58].mxu1 %vm1732_vm11, %v3687_v21  ;;  %2921 = vmatprep.mubr.msk.f32.mxu0 %vm1735_vm6, %v3687_v21  ;;  %v2885_v37 = vsel %vm1734_vm9, 1.0, %v3686_v23  ;;  %vm1739_vm14 = vcmp.eq.s32.totalorder %v3967_v11, %v1677_v53  ;;  %v3448_v48 = vld [vmem:[%s3921_s18 + $0x18] sm:$0xff]  ;;  %s3551_s21 = sshll.u32 %s3688_s17, 4  ;;  %s3552_s21 = int_to_ptr.vmem [resolvable:$false] %s3551_s21 }
 0x339   : > { %2515 = vst [vmem:[%s4704_s11 + $0xd8] sm:$0xff] %v3028_v46  ;;  %v2887_v47 = vsel %vm1736_vm10, 1.0, %v3686_v23  ;;  %vm1741_vm1 = vcmp.eq.s32.totalorder %v3975_v31, %v1677_v53  ;;  %2953 = vmatprep.mubr.msk.f32.mxu1 %vm1737_vm8, %v3687_v21  ;;  %v3029_v62 = vpack.c.bf16 %v2886_v30, %v2885_v37  ;;  %v2890_v22 = vsel %vm1739_vm14, 1.0, %v3686_v23  ;;  %v3449_v37 = vld [vmem:[%s3921_s18 + $0x20] sm:$0xff]  ;;  %s3553_s14 = scalar_lea.vmem %s3552_s21, 8192  ;;  %p3554_p9 = scmp.lt.s32.totalorder %s5033_s29, %s3552_s21 }
 0x33a   : > { %v3030_v57 = vpack.c.bf16 %v2888_v16, %v2887_v47  ;;  %v2892_v44 = vsel %vm1741_vm1, 1.0, %v3686_v23  ;;  %vm1738_vm15 = vcmp.eq.s32.totalorder %v3952_v0, %v1677_v53  ;;  %vm1740_vm7 = vcmp.eq.s32.totalorder %v3963_v9, %v1677_v53 }
 0x33b   : > { %2922 = vmatmul.mubr.msk.f32.gmra.mrb[60].mxu0 %vm1734_vm9, %v3687_v21  ;;  %2516 = vst [vmem:[%s4704_s11 + $0xe0] sm:$0xff] %v3029_v62  ;;  %v2889_v11 = vsel %vm1738_vm15, 1.0, %v3686_v23  ;;  %v2891_v34 = vsel %vm1740_vm7, 1.0, %v3686_v23 }
 0x33c   : > { %2517 = vst [vmem:[%s4704_s11 + $0xe8] sm:$0xff] %v3030_v57  ;;  %2954 = vmatmul.mubr.msk.f32.gmra.mrb[60].mxu1 %vm1736_vm10, %v3687_v21  ;;  %2923 = vmatprep.mubr.msk.f32.mxu0 %vm1739_vm14, %v3687_v21  ;;  %v3031_v56 = vpack.c.bf16 %v2890_v22, %v2889_v11  ;;  %v3032_v27 = vpack.c.bf16 %v2892_v44, %v2891_v34  ;;  %v3450_v34 = vld [vmem:[%s3921_s18 + $0x28] sm:$0xff] }
 0x33d   : > { %2955 = vmatprep.mubr.msk.f32.mxu1 %vm1741_vm1, %v3687_v21 }
 0x33e   : > { %2518 = vst [vmem:[%s4704_s11 + $0xf0] sm:$0xff] %v3031_v56  ;;  %2519 = vst [vmem:[%s4704_s11 + $0xf8] sm:$0xff] %v3032_v27 }
 0x33f   : > { %2924 = vmatmul.mubr.msk.f32.gmra.mrb[62].mxu0 %vm1738_vm15, %v3687_v21 }
 0x340   : > { %2956 = vmatmul.mubr.msk.f32.gmra.mrb[62].mxu1 %vm1740_vm7, %v3687_v21 }
 0x3ad   : > { %v3132_v0 = vpop.f32.mrb[32].mxu0  ;;  %v3212_v23 = vpop.f32.mrb[32].mxu1 }
 0x3ae   : > { %v3133_v9 = vpop.f32.mrb[33].mxu0  ;;  %v3213_v6 = vpop.f32.mrb[33].mxu1 }
 0x3af   : > { %v3134_v1 = vadd.f32 %v3133_v9, %v3132_v0  ;;  %v3214_v20 = vadd.f32 %v3213_v6, %v3212_v23 }
 0x3b1   : > { %v2146_v49 = vadd.f32 %v3214_v20, %v3134_v1 }
 0x3b3   : > { %2280 = vst [vmem:[%s4991_s23] sm:$0xff] %v2146_v49  ;;  %v2224_v4 = vsub.f32 %v2146_v49, %v3445_v10 }
 0x3b4   : > { %v3135_v31 = vpop.f32.mrb[34].mxu0  ;;  %v3215_v5 = vpop.f32.mrb[34].mxu1 }
 0x3b5   : > { %v3136_v60 = vpop.f32.mrb[35].mxu0  ;;  %v3216_v13 = vpop.f32.mrb[35].mxu1  ;;  %v2240_v59 = vmul.f32 %v2224_v4, %v2224_v4 }
 0x3b6   : > { %v3137_v21 = vadd.f32 %v3136_v60, %v3135_v31  ;;  %v3217_v26 = vadd.f32 %v3216_v13, %v3215_v5 }
 0x3b8   : > { %v2151_v50 = vadd.f32 %v3217_v26, %v3137_v21  ;;  %v3451_v26 = vld [vmem:[%s3921_s18 + $0x30] sm:$0xff] }
 0x3ba   : > { %v2225_v39 = vsub.f32 %v2151_v50, %v3446_v2  ;;  %2281 = vst [vmem:[%s4991_s23 + $0x8] sm:$0xff] %v2151_v50 }
 0x3bc   : > { %v2241_v17 = vmul.f32 %v2225_v39, %v2225_v39 }
 0x3be   : > { %v3138_v43 = vpop.f32.mrb[36].mxu0  ;;  %v3218_v61 = vpop.f32.mrb[36].mxu1  ;;  %v2256_v42 = vadd.f32 %v2241_v17, %v2240_v59  ;;  %v3452_v17 = vld [vmem:[%s3921_s18 + $0x38] sm:$0xff] }
 0x3bf   : > { %v3139_v36 = vpop.f32.mrb[37].mxu0  ;;  %v3219_v3 = vpop.f32.mrb[37].mxu1 }
 0x3c0   : > { %v3140_v7 = vadd.f32 %v3139_v36, %v3138_v43  ;;  %v3220_v38 = vadd.f32 %v3219_v3, %v3218_v61 }
 0x3c2   : > { %v2156_v18 = vadd.f32 %v3220_v38, %v3140_v7 }
 0x3c4   : > { %v2226_v45 = vsub.f32 %v2156_v18, %v3447_v28  ;;  %2282 = vst [vmem:[%s4991_s23 + $0x10] sm:$0xff] %v2156_v18 }
 0x3c6   : > { %v3141_v8 = vpop.f32.mrb[38].mxu0  ;;  %v3221_v40 = vpop.f32.mrb[38].mxu1  ;;  %v2242_v33 = vmul.f32 %v2226_v45, %v2226_v45 }
 0x3c7   : > { %v3142_v55 = vpop.f32.mrb[39].mxu0  ;;  %v3222_v54 = vpop.f32.mrb[39].mxu1 }
 0x3c8   : > { %v3143_v35 = vadd.f32 %v3142_v55, %v3141_v8  ;;  %v3223_v19 = vadd.f32 %v3222_v54, %v3221_v40  ;;  %v2257_v51 = vadd.f32 %v2256_v42, %v2242_v33  ;;  %v3453_v54 = vld [vmem:[%s3921_s18 + $0x40] sm:$0xff] }
 0x3ca   : > { %v2161_v63 = vadd.f32 %v3223_v19, %v3143_v35 }
 0x3cc   : > { %v2227_v12 = vsub.f32 %v2161_v63, %v3448_v48  ;;  %2283 = vst [vmem:[%s4991_s23 + $0x18] sm:$0xff] %v2161_v63 }
 0x3ce   : > { %v2243_v32 = vmul.f32 %v2227_v12, %v2227_v12 }
 0x3d0   : > { %v2258_v41 = vadd.f32 %v2257_v51, %v2243_v32  ;;  %v3144_v58 = vpop.f32.mrb[40].mxu0  ;;  %v3224_v29 = vpop.f32.mrb[40].mxu1  ;;  %v3454_v32 = vld [vmem:[%s3921_s18 + $0x48] sm:$0xff] }
 0x3d1   : > { %v3145_v15 = vpop.f32.mrb[41].mxu0  ;;  %v3225_v24 = vpop.f32.mrb[41].mxu1 }
 0x3d2   : > { %v3146_v52 = vadd.f32 %v3145_v15, %v3144_v58  ;;  %v3226_v25 = vadd.f32 %v3225_v24, %v3224_v29 }
 0x3d4   : > { %v2166_v53 = vadd.f32 %v3226_v25, %v3146_v52  ;;  %v3147_v14 = vpop.f32.mrb[42].mxu0  ;;  %v3227_v46 = vpop.f32.mrb[42].mxu1 }
 0x3d5   : > { %v3148_v30 = vpop.f32.mrb[43].mxu0  ;;  %v3228_v16 = vpop.f32.mrb[43].mxu1 }
 0x3d6   : > { %v2228_v47 = vsub.f32 %v2166_v53, %v3449_v37  ;;  %2284 = vst [vmem:[%s4991_s23 + $0x20] sm:$0xff] %v2166_v53  ;;  %v3149_v62 = vadd.f32 %v3148_v30, %v3147_v14  ;;  %v3229_v57 = vadd.f32 %v3228_v16, %v3227_v46 }
 0x3d8   : > { %v2244_v22 = vmul.f32 %v2228_v47, %v2228_v47  ;;  %v2171_v44 = vadd.f32 %v3229_v57, %v3149_v62  ;;  %v3455_v57 = vld [vmem:[%s3921_s18 + $0x50] sm:$0xff] }
 0x3da   : > { %v2259_v11 = vadd.f32 %v2258_v41, %v2244_v22  ;;  %v2229_v56 = vsub.f32 %v2171_v44, %v3450_v34  ;;  %2285 = vst [vmem:[%s4991_s23 + $0x28] sm:$0xff] %v2171_v44 }
 0x3dc   : > { %v2245_v27 = vmul.f32 %v2229_v56, %v2229_v56 }
 0x3de   : > { %v2260_v0 = vadd.f32 %v2259_v11, %v2245_v27 }
 0x3df   : > { %v3150_v23 = vpop.f32.mrb[44].mxu0  ;;  %v3230_v9 = vpop.f32.mrb[44].mxu1 }
 0x3e0   : > { %v3151_v6 = vpop.f32.mrb[45].mxu0  ;;  %v3231_v1 = vpop.f32.mrb[45].mxu1 }
 0x3e1   : > { %v3152_v20 = vadd.f32 %v3151_v6, %v3150_v23  ;;  %v3232_v49 = vadd.f32 %v3231_v1, %v3230_v9  ;;  %v3456_v1 = vld [vmem:[%s3921_s18 + $0x58] sm:$0xff] }
 0x3e3   : > { %v2176_v31 = vadd.f32 %v3232_v49, %v3152_v20  ;;  %v3153_v5 = vpop.f32.mrb[46].mxu0  ;;  %v3233_v60 = vpop.f32.mrb[46].mxu1 }
 0x3e4   : > { %v3154_v13 = vpop.f32.mrb[47].mxu0  ;;  %v3234_v21 = vpop.f32.mrb[47].mxu1 }
 0x3e5   : > { %v2230_v10 = vsub.f32 %v2176_v31, %v3451_v26  ;;  %2286 = vst [vmem:[%s4991_s23 + $0x30] sm:$0xff] %v2176_v31  ;;  %v3155_v4 = vadd.f32 %v3154_v13, %v3153_v5  ;;  %v3235_v50 = vadd.f32 %v3234_v21, %v3233_v60 }
 0x3e7   : > { %v2246_v2 = vmul.f32 %v2230_v10, %v2230_v10  ;;  %v2181_v39 = vadd.f32 %v3235_v50, %v3155_v4  ;;  %v3457_v50 = vld [vmem:[%s3921_s18 + $0x60] sm:$0xff] }
 0x3e9   : > { %v2261_v59 = vadd.f32 %v2260_v0, %v2246_v2  ;;  %v2231_v43 = vsub.f32 %v2181_v39, %v3452_v17  ;;  %2287 = vst [vmem:[%s4991_s23 + $0x38] sm:$0xff] %v2181_v39 }
 0x3eb   : > { %v2247_v61 = vmul.f32 %v2231_v43, %v2231_v43 }
 0x3ed   : > { %v2262_v42 = vadd.f32 %v2261_v59, %v2247_v61 }
 0x3f0   : > { %v3156_v36 = vpop.f32.mrb[48].mxu0  ;;  %v3236_v3 = vpop.f32.mrb[48].mxu1 }
 0x3f1   : > { %v3157_v7 = vpop.f32.mrb[49].mxu0  ;;  %v3237_v38 = vpop.f32.mrb[49].mxu1 }
 0x3f2   : > { %v3158_v18 = vadd.f32 %v3157_v7, %v3156_v36  ;;  %v3238_v28 = vadd.f32 %v3237_v38, %v3236_v3  ;;  %v3458_v38 = vld [vmem:[%s3921_s18 + $0x68] sm:$0xff] }
 0x3f4   : > { %v2186_v45 = vadd.f32 %v3238_v28, %v3158_v18  ;;  %v3159_v8 = vpop.f32.mrb[50].mxu0  ;;  %v3239_v40 = vpop.f32.mrb[50].mxu1 }
 0x3f5   : > { %v3160_v33 = vpop.f32.mrb[51].mxu0  ;;  %v3240_v55 = vpop.f32.mrb[51].mxu1 }
 0x3f6   : > { %v2232_v35 = vsub.f32 %v2186_v45, %v3453_v54  ;;  %2288 = vst [vmem:[%s4991_s23 + $0x40] sm:$0xff] %v2186_v45  ;;  %v3161_v19 = vadd.f32 %v3160_v33, %v3159_v8  ;;  %v3241_v51 = vadd.f32 %v3240_v55, %v3239_v40 }
 0x3f8   : > { %v2248_v63 = vmul.f32 %v2232_v35, %v2232_v35  ;;  %v2191_v48 = vadd.f32 %v3241_v51, %v3161_v19  ;;  %v3459_v19 = vld [vmem:[%s3921_s18 + $0x70] sm:$0xff] }
 0x3fa   : > { %v2263_v12 = vadd.f32 %v2262_v42, %v2248_v63  ;;  %v2233_v41 = vsub.f32 %v2191_v48, %v3454_v32  ;;  %2289 = vst [vmem:[%s4991_s23 + $0x48] sm:$0xff] %v2191_v48 }
 0x3fc   : > { %v2249_v58 = vmul.f32 %v2233_v41, %v2233_v41  ;;  %v3460_v41 = vld [vmem:[%s3921_s18 + $0x78] sm:$0xff]  ;;  %s3547_s18 = scalar_lea.vmem %s5033_s29, 4096 }
 0x3fd   : > { %p3548_p0 = scmp.ne.s32.totalorder %s5033_s29, %s3547_s18  ;;  %p3555_p12 = scmp.lt.s32.totalorder %s3553_s14, %s3547_s18 }
 0x3fe   : > { %v2264_v29 = vadd.f32 %v2263_v12, %v2249_v58  ;;  %v3162_v15 = vpop.f32.mrb[52].mxu0 }
 0x3ff   : > { %v3242_v24 = vpop.f32.mrb[52].mxu1  ;;  %v3163_v52 = vpop.f32.mrb[53].mxu0  ;;  %p3549_p3 = pnand %p3548_p0, %p5209_p1  ;;  %p3556_p2 = por %p3555_p12, %p3554_p9 }
 0x400   : > { %v3164_v25 = vadd.f32 %v3163_v52, %v3162_v15  ;;  %v3243_v53 = vpop.f32.mrb[53].mxu1 }
 0x401   : > { %v3244_v14 = vadd.f32 %v3243_v53, %v3242_v24  ;;  %p3550_p5 = pneg %p3549_p3 }
 0x402   : > { %v3165_v46 = vpop.f32.mrb[54].mxu0 }
 0x403   : > { %v2196_v30 = vadd.f32 %v3244_v14, %v3164_v25  ;;  %v3245_v16 = vpop.f32.mrb[54].mxu1  ;;  %v3166_v37 = vpop.f32.mrb[55].mxu0  ;;  %p3557_p13 = pnand %p3556_p2, %p3550_p5 }
 0x404   : > { %v3167_v47 = vadd.f32 %v3166_v37, %v3165_v46  ;;  %v3246_v62 = vpop.f32.mrb[55].mxu1 }
 0x405   : > { %v2234_v22 = vsub.f32 %v2196_v30, %v3455_v57  ;;  %2290 = vst [vmem:[%s4991_s23 + $0x50] sm:$0xff] %v2196_v30  ;;  %v3247_v44 = vadd.f32 %v3246_v62, %v3245_v16 }
 0x406   : > { %v3168_v11 = vpop.f32.mrb[56].mxu0 }
 0x407   : > { %v2250_v34 = vmul.f32 %v2234_v22, %v2234_v22  ;;  %v2201_v56 = vadd.f32 %v3247_v44, %v3167_v47  ;;  %v3248_v27 = vpop.f32.mrb[56].mxu1  ;;  %v3169_v0 = vpop.f32.mrb[57].mxu0 }
 0x408   : > { %v3170_v23 = vadd.f32 %v3169_v0, %v3168_v11  ;;  %v3249_v9 = vpop.f32.mrb[57].mxu1 }
 0x409   : > { %v2265_v6 = vadd.f32 %v2264_v29, %v2250_v34  ;;  %v2235_v20 = vsub.f32 %v2201_v56, %v3456_v1  ;;  %2291 = vst [vmem:[%s4991_s23 + $0x58] sm:$0xff] %v2201_v56  ;;  %v3250_v49 = vadd.f32 %v3249_v9, %v3248_v27 }
 0x40a   : > { %v3171_v31 = vpop.f32.mrb[58].mxu0 }
 0x40b   : > { %v2251_v5 = vmul.f32 %v2235_v20, %v2235_v20  ;;  %v2206_v60 = vadd.f32 %v3250_v49, %v3170_v23  ;;  %v3251_v13 = vpop.f32.mrb[58].mxu1  ;;  %v3172_v21 = vpop.f32.mrb[59].mxu0 }
 0x40c   : > { %v3173_v26 = vadd.f32 %v3172_v21, %v3171_v31  ;;  %v3252_v10 = vpop.f32.mrb[59].mxu1 }
 0x40d   : > { %v2266_v4 = vadd.f32 %v2265_v6, %v2251_v5  ;;  %v2236_v2 = vsub.f32 %v2206_v60, %v3457_v50  ;;  %2292 = vst [vmem:[%s4991_s23 + $0x60] sm:$0xff] %v2206_v60  ;;  %v3253_v39 = vadd.f32 %v3252_v10, %v3251_v13 }
 0x40e   : > { %v3174_v59 = vpop.f32.mrb[60].mxu0 }
 0x40f   : > { %v2252_v17 = vmul.f32 %v2236_v2, %v2236_v2  ;;  %v2211_v43 = vadd.f32 %v3253_v39, %v3173_v26  ;;  %v3254_v61 = vpop.f32.mrb[60].mxu1  ;;  %v3175_v42 = vpop.f32.mrb[61].mxu0 }
 0x410   : > { %v3176_v36 = vadd.f32 %v3175_v42, %v3174_v59  ;;  %v3255_v3 = vpop.f32.mrb[61].mxu1 }
 0x411   : > { %v2267_v7 = vadd.f32 %v2266_v4, %v2252_v17  ;;  %v2237_v18 = vsub.f32 %v2211_v43, %v3458_v38  ;;  %2293 = vst [vmem:[%s4991_s23 + $0x68] sm:$0xff] %v2211_v43  ;;  %v3256_v28 = vadd.f32 %v3255_v3, %v3254_v61 }
 0x412   : > { %v3177_v45 = vpop.f32.mrb[62].mxu0 }
 0x413   : > { %v2253_v8 = vmul.f32 %v2237_v18, %v2237_v18  ;;  %v2216_v40 = vadd.f32 %v3256_v28, %v3176_v36  ;;  %v3257_v33 = vpop.f32.mrb[62].mxu1  ;;  %v3178_v55 = vpop.f32.mrb[63].mxu0 }
 0x414   : > { %v3179_v54 = vadd.f32 %v3178_v55, %v3177_v45  ;;  %v3258_v35 = vpop.f32.mrb[63].mxu1 }
 0x415   : > { %v2238_v51 = vsub.f32 %v2216_v40, %v3459_v19  ;;  %2294 = vst [vmem:[%s4991_s23 + $0x70] sm:$0xff] %v2216_v40  ;;  %v3259_v63 = vadd.f32 %v3258_v35, %v3257_v33  ;;  %v2268_v48 = vadd.f32 %v2267_v7, %v2253_v8 }
 0x417   : > { %v2254_v12 = vmul.f32 %v2238_v51, %v2238_v51  ;;  %v2221_v32 = vadd.f32 %v3259_v63, %v3179_v54 }
 0x419   : > { %2295 = vst [vmem:[%s4991_s23 + $0x78] sm:$0xff] %v2221_v32  ;;  %v2239_v58 = vsub.f32 %v2221_v32, %v3460_v41  ;;  %v2269_v29 = vadd.f32 %v2268_v48, %v2254_v12 }
 0x41b   : > { %v2255_v15 = vmul.f32 %v2239_v58, %v2239_v58 }
 0x41d   : > { %v2270_v24 = vadd.f32 %v2269_v29, %v2255_v15 }
 0x41f   : > { %2271 = vadd.xlane.f32.xlu0 %v2270_v24 }
 0x420   : > { %3560 = shalt.err (!%p3557_p13)
}
 0x421   : > { %s3561_s11 = scalar_lea.hbm %s5031_s10, 4096  ;;  %s3565_s30 = scalar_lea.hbm %s5148_s5, 8192 }
 0x422   : > { %p3562_p6 = scmp.ne.s32.totalorder %s5031_s10, %s3561_s11  ;;  %p3566_p7 = scmp.lt.u32.totalorder %s5031_s10, %s5148_s5 }
 0x423   : > { %p3567_p8 = scmp.lt.u32.totalorder %s3565_s30, %s3561_s11  ;;  %p3569_p0 = scmp.lt.u32.totalorder %s3561_s11, %s5031_s10 }
 0x424   : > { %p3563_p10 = pnand %p3562_p6, %p5209_p1 }
 0x425   : > { %p3568_p11 = por %p3567_p8, %p3566_p7 }
 0x426   : > { %p3564_p4 = pneg %p3563_p10 }
 0x427   : > { %p3570_p3 = por %p3569_p0, %p3568_p11 }
 0x429   : > { %p3571_p5 = pnand %p3570_p3, %p3564_p4 }
 0x42b   : > { %3574 = shalt.err (!%p3571_p5)
}
 0x42c   : > { %s3689_s18 = smov 256   ;;  %s3690_s21 = smov 16  }
 0x42d   : > { %3337 = dma.vmem_to_hbm [thread:$0]  (%p5209_p1), %s5033_s29, 4096, %s5031_s10, %s5035_s13, %s3689_s18, %s3689_s18, %s3690_s21  }
 0x42e   : > { %s3033_s14 = sshll.u32 %s3756_s28, 11  ;;  %s2568_s30 = sshll.u32 %s4991_s23, 4  ;;  %s5066_s30 = int_to_ptr.vmem [resolvable:$true] %s2568_s30 }
 0x42f   : > { %s5063_s11 = scalar_lea.hbm %s5147_s4, %s3033_s14  ;;  %s2540_s9 = scalar_lea.sflag [#allocation4], %s3915_s22 }
 0x430   : > { %s3575_s17 = scalar_lea.vmem %s5066_s30, 2048  ;;  %s3691_s0 = smov [#allocation8]  }
 0x431   : > { %p3576_p9 = scmp.ne.s32.totalorder %s5066_s30, %s3575_s17  ;;  %s3579_s29 = sshll.u32 %s3691_s0, 4  ;;  %s3580_s29 = int_to_ptr.vmem [resolvable:$false] %s3579_s29 }
 0x432   : > { %s3581_s10 = scalar_lea.vmem %s3580_s29, 4096  ;;  %p3582_p13 = scmp.lt.s32.totalorder %s5066_s30, %s3580_s29 }
 0x433   : > { %p3577_p12 = pnand %p3576_p9, %p5209_p1  ;;  %p3583_p6 = scmp.lt.s32.totalorder %s3581_s10, %s3575_s17 }
 0x435   : > { %p3578_p2 = pneg %p3577_p12  ;;  %p3584_p10 = por %p3583_p6, %p3582_p13 }
 0x437   : > { %p3585_p4 = pnand %p3584_p10, %p3578_p2 }
 0x439   : > { %3588 = shalt.err (!%p3585_p4)
}
 0x43a   : > { %s3589_s23 = scalar_lea.hbm %s5063_s11, 2048  ;;  %s3593_s0 = scalar_lea.hbm %s5147_s4, 4096 }
 0x43b   : > { %p3590_p7 = scmp.ne.s32.totalorder %s5063_s11, %s3589_s23  ;;  %p3594_p0 = scmp.lt.u32.totalorder %s5063_s11, %s5147_s4 }
 0x43c   : > { %p3595_p3 = scmp.lt.u32.totalorder %s3593_s0, %s3589_s23  ;;  %p3597_p9 = scmp.lt.u32.totalorder %s3589_s23, %s5063_s11 }
 0x43d   : > { %p3591_p8 = pnand %p3590_p7, %p5209_p1 }
 0x43e   : > { %p3596_p5 = por %p3595_p3, %p3594_p0 }
 0x43f   : > { %p3592_p11 = pneg %p3591_p8 }
 0x440   : > { %p3598_p12 = por %p3597_p9, %p3596_p5 }
 0x442   : > { %p3599_p2 = pnand %p3598_p12, %p3592_p11 }
 0x444   : > { %3602 = shalt.err (!%p3599_p2)
}
 0x445   : > { %s3692_s20 = smov 128   ;;  %s3693_s17 = smov 8  }
 0x446   : > { %3336 = dma.vmem_to_hbm [thread:$0]  (%p5209_p1), %s5066_s30, 2048, %s5063_s11, %s2540_s9, %s3692_s20, %s3692_s20, %s3693_s17  }
 0x447   : > { %s2794_s29 = sshll.u32 %s3915_s22, 3  ;;  %s2997_s18 = sshll.u32 %s3756_s28, 7 }
 0x448   : > { %s350_s10 = scalar_lea.vmem [#allocation11], %s2794_s29  ;;  %s5099_s9 = scalar_lea.hbm %s5150_s7, %s2997_s18 }
 0x449   : > { %s2605_s23 = sshll.u32 %s350_s10, 4  ;;  %s3694_s22 = smov [#allocation11]   ;;  %s5094_s23 = int_to_ptr.vmem [resolvable:$true] %s2605_s23 }
 0x44a   : > { %s3603_s0 = scalar_lea.vmem %s5094_s23, 128  ;;  %s3607_s28 = sshll.u32 %s3694_s22, 4  ;;  %s3608_s28 = int_to_ptr.vmem [resolvable:$false] %s3607_s28 }
 0x44b   : > { %p3604_p13 = scmp.ne.s32.totalorder %s5094_s23, %s3603_s0  ;;  %s3609_s14 = scalar_lea.vmem %s3608_s28, 256 }
 0x44c   : > { %p3610_p4 = scmp.lt.s32.totalorder %s5094_s23, %s3608_s28  ;;  %p3611_p7 = scmp.lt.s32.totalorder %s3609_s14, %s3603_s0 }
 0x44d   : > { %p3605_p6 = pnand %p3604_p13, %p5209_p1 }
 0x44e   : > { %p3612_p8 = por %p3611_p7, %p3610_p4 }
 0x44f   : > { %p3606_p10 = pneg %p3605_p6 }
 0x451   : > { %p3613_p11 = pnand %p3612_p8, %p3606_p10 }
 0x4ac   : > { %v2272_v52 = vpop.xlane.xlu0 %2271 }
 0x4ad   : > { %v2273_v25 = vrot.slane %v2272_v52, 4 }
 0x4af   : > { %v2274_v53 = vadd.f32 %v2273_v25, %v2272_v52 }
 0x4b1   : > { %v2275_v14 = vrot.slane %v2274_v53, 2 }
 0x4b3   : > { %v2276_v46 = vadd.f32 %v2275_v14, %v2274_v53 }
 0x4b5   : > { %v2277_v30 = vrot.slane %v2276_v46, 1 }
 0x4b7   : > { %v2278_v16 = vadd.f32 %v2277_v30, %v2276_v46 }
 0x4b9   : > { %3324 = vpush %v2278_v16 }
 0x4ea   : > { %s3325_s21 = spop %3324 }
 0x4eb   : > { %v2537_v37 = vstv %s3325_s21 }
 0x4ec   : > { %2538 = vst [vmem:[%s350_s10] sm:$0xff] %v2537_v37 }
 0x4ed   : > { %3616 = shalt.err (!%p3613_p11)
}
 0x4ee   : > { %s3617_s15 = scalar_lea.hbm %s5099_s9, 128  ;;  %s3621_s29 = scalar_lea.hbm %s5150_s7, 256 }
 0x4ef   : > { %p3618_p0 = scmp.ne.s32.totalorder %s5099_s9, %s3617_s15  ;;  %p3622_p9 = scmp.lt.u32.totalorder %s5099_s9, %s5150_s7 }
 0x4f0   : > { %p3623_p12 = scmp.lt.u32.totalorder %s3621_s29, %s3617_s15  ;;  %p3625_p13 = scmp.lt.u32.totalorder %s3617_s15, %s5099_s9 }
 0x4f1   : > { %p3619_p3 = pnand %p3618_p0, %p5209_p1 }
 0x4f2   : > { %p3624_p2 = por %p3623_p12, %p3622_p9 }
 0x4f3   : > { %p3620_p5 = pneg %p3619_p3 }
 0x4f4   : > { %p3626_p6 = por %p3625_p13, %p3624_p2 }
 0x4f6   : > { %p3627_p10 = pnand %p3626_p6, %p3620_p5 }
 0x4f8   : > { %3630 = shalt.err (!%p3627_p10)
}
 0x4f9   : > { %3338 = dma.vmem_to_hbm [thread:$0]  (%p5209_p1), %s5094_s23, 128, %s5099_s9, %s5035_s13  }
 0x4fa PF: > { %s2617_s21 = sand.u32 1, %s3665_s24   ;;  %p5210_p4 = scmp.ne.s32.totalorder %s5165_s8, 0 }
 0x4fb   : > { %p5211_p7 = scmp.ge.s32.totalorder %s3677_s27, 2  ;;  %s2618_s11 = scalar_lea.sflag [#allocation4], %s2617_s21 }
 0x4fd   : > { %p3354_p8 = pnand %p5211_p7, %p5210_p4 }
 0x4ff   : > { %3656 = dma.done.wait (!%p3354_p8), %s2618_s11, 2048  }
 0x500   : > { %3658 = vsyncadd (!%p3354_p8), %s2618_s11, 4294965248  ;;  %s5212_s30 = sadd.s32 4294967294, %s3677_s27  }
 0x501   : > { %s2626_s0 = sand.u32 1, %s5212_s30  }
 0x502   : > { %s2627_s22 = scalar_lea.sflag [#allocation10], %s2626_s0 }
 0x503   : > { %3660 = dma.done.wait (!%p3354_p8), %s2627_s22, 4224  }
 0x504   : > { %3662 = vsyncadd (!%p3354_p8), %s2627_s22, 4294963072  ;;  %p25_p1 = scmp.ge.s32.totalorder %s3850_s16, 4   ;;  %s5213_s24 = smov %s3669_s25 }
 0x505   : > { %s5214_s25 = smov %s3673_s26  ;;  %s5215_s26 = smov %s3859_s19 }
 0x506   : > { %s5216_s27 = smov %s3850_s16  ;;  %27 = sbr.rel (!%p25_p1) target bundleno = 10 (0xa), region = 133 }
 0x50d   :  { %2649 = vsyncpa [#allocation3], 1 }
 0x50e   :  { %2651 = vsyncpa [#allocation3 + $0x1], 1 }
 0x50f   :  { %2652 = vsyncpa [#allocation6], 1 }
 0x510   :  { %2653 = vsyncpa [#allocation4], 1 }
 0x511   :  { %2655 = vsyncpa [#allocation4 + $0x1], 1 }
 0x512   :  { %2656 = vsyncpa [#allocation10], 1 }
 0x513   :  { %2658 = vsyncpa [#allocation10 + $0x1], 1 }

</bundles_post_ra>
